<compile_context>
chip_gen: v6e
topology: v6e:2x2x1
jax: 0.10.0
libtpu: 0.0.40
codegen_flags: <defaults>
</compile_context>

<pallas_src>
import functools
import math

import jax
import jax.numpy as jnp
from jax.experimental import pallas as pl
from jax.experimental.pallas import tpu as pltpu


def _round_up(v, m):
    return ((v + m - 1) // m) * m


def _interp_matrix(n_in: int, n_out: int) -> jnp.ndarray:
    """Interpolation matrix A (n_out, n_in): out = A @ in, align_corners=True."""
    if n_out == 1:
        src = jnp.zeros((1,), jnp.float32)
    else:
        src = jnp.arange(n_out, dtype=jnp.float32) * ((n_in - 1) / (n_out - 1))
    i0 = jnp.clip(jnp.floor(src).astype(jnp.int32), 0, n_in - 1)
    i1 = jnp.clip(i0 + 1, 0, n_in - 1)
    w1 = src - i0.astype(jnp.float32)
    w0 = 1.0 - w1
    return (jax.nn.one_hot(i0, n_in, dtype=jnp.float32) * w0[:, None]
            + jax.nn.one_hot(i1, n_in, dtype=jnp.float32) * w1[:, None])


def _bn_fold_scale_bias(b, gamma, beta, mean, var, eps=1e-5):
    s = gamma / jnp.sqrt(var + eps)
    return s, s * (b - mean) + beta


# ----------------------------------------------------------------------------
# Fused kernel: upsample(+pad) -> conv1+BN+ReLU -> conv2+BN+ReLU -> concat
# ----------------------------------------------------------------------------
def _fused_decoder_kernel(x_ref, m_ref, w1_ref, s1_ref, b1_ref,
                          w2_ref, s2_ref, b2_ref, mask_ref,
                          o_ref, tap_scr, *, Cin, Cin_p, Cmid_p, Wp, L):
    Lout = o_ref.shape[2]                       # = Ho * Wp

    # ---- 1) bilinear upsample (align_corners=True), zero border baked into M ----
    # one f32 MXU matmul; result is the flat padded plane (Cin_p, Hp*Wp).
    xup = jnp.dot(x_ref[0], m_ref[...], preferred_element_type=jnp.float32)

    # skip channels of the final concat: one lane-dense bulk store (stays f32).
    o_ref[0, :Cin, :] = xup[:Cin, Wp + 1:Wp + 1 + Lout]

    # ---- 2) conv1 3x3 + BN + ReLU : stacked-tap single matmul -------------------
    xup_bf = xup.astype(jnp.bfloat16)           # cast the slab once
    for k in range(9):
        dy, dx = divmod(k, 3)
        off = dy * Wp + dx
        tap_scr[k * Cin_p:(k + 1) * Cin_p, :] = xup_bf[:, off:off + L]
    a1 = jnp.dot(w1_ref[...], tap_scr[:9 * Cin_p, :],
                 preferred_element_type=jnp.float32)               # (Cmid_p, L)
    h1 = jnp.maximum(a1 * s1_ref[...] + b1_ref[...], 0.0) * mask_ref[...]

    # ---- 3) conv2 3x3 + BN + ReLU : re-pad h1, stacked-tap single matmul --------
    zb = jnp.zeros((Cmid_p, Wp + 1), jnp.float32)
    h1_pad = jnp.concatenate([zb, h1, zb], axis=1).astype(jnp.bfloat16)  # (Cmid_p, Hp*Wp)
    for k in range(9):
        dy, dx = divmod(k, 3)
        off = dy * Wp + dx
        tap_scr[k * Cmid_p:(k + 1) * Cmid_p, :] = h1_pad[:, off:off + L]
    a2 = jnp.dot(w2_ref[...], tap_scr[:9 * Cmid_p, :],
                 preferred_element_type=jnp.float32)               # (Cout, L)
    o_ref[0, Cin:, :L] = jnp.maximum(a2 * s2_ref[...] + b2_ref[...], 0.0)


# ----------------------------------------------------------------------------
# Parameters & forward
# ----------------------------------------------------------------------------
def init_resnet_decoder_block(key, in_channels, out_channels):
    """DoubleConv: Conv(in,mid,3)->BN->ReLU->Conv(mid,out,3)->BN->ReLU, mid=out."""
    mid = out_channels
    ks = jax.random.split(key, 12)
    return {
        "conv1_w": jax.random.normal(ks[0], (mid, in_channels, 3, 3), jnp.float32) * 0.1,
        "conv1_b": jax.random.normal(ks[1], (mid,), jnp.float32) * 0.05,
        "bn1_gamma": 0.5 + jax.random.uniform(ks[2], (mid,), jnp.float32),
        "bn1_beta": jax.random.normal(ks[3], (mid,), jnp.float32) * 0.1,
        "bn1_mean": jax.random.normal(ks[4], (mid,), jnp.float32) * 0.1,
        "bn1_var": 0.5 + jax.random.uniform(ks[5], (mid,), jnp.float32),
        "conv2_w": jax.random.normal(ks[6], (out_channels, mid, 3, 3), jnp.float32) * 0.1,
        "conv2_b": jax.random.normal(ks[7], (out_channels,), jnp.float32) * 0.05,
        "bn2_gamma": 0.5 + jax.random.uniform(ks[8], (out_channels,), jnp.float32),
        "bn2_beta": jax.random.normal(ks[9], (out_channels,), jnp.float32) * 0.1,
        "bn2_mean": jax.random.normal(ks[10], (out_channels,), jnp.float32) * 0.1,
        "bn2_var": 0.5 + jax.random.uniform(ks[11], (out_channels,), jnp.float32),
    }


def resnet_decoder_block_forward(params, x, scale_factor=2.0, size=None):
    """x: (N, Cin, H, W) -> (N, Cin + out_channels, Ho, Wo)   (NCHW, like PyTorch)."""
    N, Cin, H, W = x.shape
    if size is not None:
        Ho, Wo = size
    else:
        if isinstance(scale_factor, (tuple, list)):
            sh, sw = scale_factor
        else:
            sh = sw = float(scale_factor)
        Ho, Wo = int(math.floor(H * sh)), int(math.floor(W * sw))
    Hp, Wp = Ho + 2, Wo + 2
    Lout = Ho * Wp
    L = Lout - 2                     # max flat compute length the tap slices allow

    Cmid = params["conv1_w"].shape[0]
    Cout = params["conv2_w"].shape[0]
    Cin_p = _round_up(Cin, 8)        # sublane-align the stacked-tap blocks
    Cmid_p = _round_up(Cmid, 8)
    Ctot = Cin + Cout

    x = x.astype(jnp.float32)
    if Cin_p != Cin:                 # zero channel padding contributes nothing
        x = jnp.concatenate([x, jnp.zeros((N, Cin_p - Cin, H, W), jnp.float32)], axis=1)
    x_flat = x.reshape(N, Cin_p, H * W)          # contiguous -> free reshape

    # interpolation matrix with the zero conv border baked in (one MXU matmul in-kernel)
    ah = _interp_matrix(H, Ho)                                   # (Ho, H)
    aw = _interp_matrix(W, Wo)                                   # (Wo, W)
    ah_pad = jnp.zeros((Hp, H), jnp.float32).at[1:Ho + 1].set(ah)
    aw_pad = jnp.zeros((W, Wp), jnp.float32).at[:, 1:Wo + 1].set(aw.T)
    m = jnp.kron(ah_pad.T, aw_pad)                               # (H*W, Hp*Wp)

    # conv weights stacked along the 9 taps, BN folded, channel-padded, bf16 for the MXU
    s1, b1 = _bn_fold_scale_bias(params["conv1_b"], params["bn1_gamma"],
                                 params["bn1_beta"], params["bn1_mean"], params["bn1_var"])
    s2, b2 = _bn_fold_scale_bias(params["conv2_b"], params["bn2_gamma"],
                                 params["bn2_beta"], params["bn2_mean"], params["bn2_var"])
    w1p = jnp.zeros((Cmid_p, Cin_p, 3, 3), jnp.float32).at[:Cmid, :Cin].set(params["conv1_w"])
    w2p = jnp.zeros((Cout, Cmid_p, 3, 3), jnp.float32).at[:, :Cmid].set(params["conv2_w"])
    w1f = jnp.transpose(w1p, (0, 2, 3, 1)).reshape(Cmid_p, 9 * Cin_p).astype(jnp.bfloat16)
    w2f = jnp.transpose(w2p, (0, 2, 3, 1)).reshape(Cout, 9 * Cmid_p).astype(jnp.bfloat16)
    s1p = jnp.zeros((Cmid_p, 1), jnp.float32).at[:Cmid, 0].set(s1)
    b1p = jnp.zeros((Cmid_p, 1), jnp.float32).at[:Cmid, 0].set(b1)
    s2r = s2.reshape(Cout, 1)
    b2r = b2.reshape(Cout, 1)

    # validity mask over the flat compute index (zero the left/right padding columns)
    mask = ((jnp.arange(L, dtype=jnp.int32) % Wp) < Wo).astype(jnp.float32).reshape(1, L)

    kernel = functools.partial(_fused_decoder_kernel, Cin=Cin, Cin_p=Cin_p,
                               Cmid_p=Cmid_p, Wp=Wp, L=L)
    out_flat = pl.pallas_call(
        kernel,
        out_shape=jax.ShapeDtypeStruct((N, Ctot, Lout), jnp.float32),
        grid=(N,),
        in_specs=[
            pl.BlockSpec((1, Cin_p, H * W), lambda n: (n, 0, 0)),
            pl.BlockSpec((H * W, Hp * Wp), lambda n: (0, 0)),
            pl.BlockSpec((Cmid_p, 9 * Cin_p), lambda n: (0, 0)),
            pl.BlockSpec((Cmid_p, 1), lambda n: (0, 0)),
            pl.BlockSpec((Cmid_p, 1), lambda n: (0, 0)),
            pl.BlockSpec((Cout, 9 * Cmid_p), lambda n: (0, 0)),
            pl.BlockSpec((Cout, 1), lambda n: (0, 0)),
            pl.BlockSpec((Cout, 1), lambda n: (0, 0)),
            pl.BlockSpec((1, L), lambda n: (0, 0)),
        ],
        out_specs=pl.BlockSpec((1, Ctot, Lout), lambda n: (n, 0, 0)),
        scratch_shapes=[pltpu.VMEM((9 * max(Cin_p, Cmid_p), L), jnp.bfloat16)],
        compiler_params=pltpu.CompilerParams(dimension_semantics=("parallel",)),
    )(x_flat, m, w1f, s1p, b1p, w2f, s2r, b2r, mask)

    # drop the 2 padding columns per output row: (N,C,Ho*Wp) -> (N,C,Ho,Wo)
    return out_flat.reshape(N, Ctot, Ho, Wp)[:, :, :, :Wo]


# ----------------------------------------------------------------------------
# Pure-JAX f32 reference (same math, no Pallas) for a sanity check
# ----------------------------------------------------------------------------
def _reference_forward(params, x, scale_factor=2.0):
    N, Cin, H, W = x.shape
    Ho, Wo = int(math.floor(H * scale_factor)), int(math.floor(W * scale_factor))
    ah = _interp_matrix(H, Ho)
    aw = _interp_matrix(W, Wo)
    x_up = jnp.einsum("oh,nchw,pw->ncop", ah, x.astype(jnp.float32), aw)

    def conv_bn_relu(xn, w_oihw, s, t):
        w_hwio = jnp.transpose(w_oihw, (2, 3, 1, 0))
        y = jax.lax.conv_general_dilated(
            xn, w_hwio, (1, 1), "SAME",
            dimension_numbers=("NHWC", "HWIO", "NHWC"))
        return jnp.maximum(y * s + t, 0.0)

    s1, b1 = _bn_fold_scale_bias(params["conv1_b"], params["bn1_gamma"],
                                 params["bn1_beta"], params["bn1_mean"], params["bn1_var"])
    s2, b2 = _bn_fold_scale_bias(params["conv2_b"], params["bn2_gamma"],
                                 params["bn2_beta"], params["bn2_mean"], params["bn2_var"])
    x_nhwc = jnp.transpose(x_up, (0, 2, 3, 1))
    h1 = conv_bn_relu(x_nhwc, params["conv1_w"], s1, b1)
    h2 = conv_bn_relu(h1, params["conv2_w"], s2, b2)
    dc = jnp.transpose(h2, (0, 3, 1, 2))
    return jnp.concatenate([x_up, dc], axis=1)


if __name__ == "__main__":
    key = jax.random.PRNGKey(0)
    k_x, k_p = jax.random.split(key)

    N, Cin, H, W = 2, 4, 16, 16
    out_channels = 8

    x = jax.random.normal(k_x, (N, Cin, H, W), jnp.float32)
    params = init_resnet_decoder_block(k_p, Cin, out_channels)

    out = jax.block_until_ready(resnet_decoder_block_forward(params, x, scale_factor=2.0))
    assert out.shape == (N, Cin + out_channels, 2 * H, 2 * W), out.shape

    ref = jax.block_until_ready(_reference_forward(params, x, scale_factor=2.0))

    # Skip (upsampled) channels are computed/stored in f32 -> tight check.
    err_skip = float(jnp.max(jnp.abs(out[:, :Cin] - ref[:, :Cin])))
    assert jnp.allclose(out[:, :Cin], ref[:, :Cin], rtol=1e-4, atol=1e-4), err_skip

    # Conv path uses bf16 MXU operands with f32 accumulation -> looser check.
    err_conv = float(jnp.max(jnp.abs(out[:, Cin:] - ref[:, Cin:])))
    assert jnp.allclose(out[:, Cin:], ref[:, Cin:], rtol=5e-2, atol=5e-2), err_conv

    print("KERNEL_OK")
</pallas_src>

<mosaic_0001>
module attributes {stable_mosaic.version = 11 : i64} {
  func.func @_fused_decoder_kernel(%arg0: i32, %arg1: memref<1x8x256xf32, #tpu.memory_space<vmem>>, %arg2: memref<256x1156xf32, #tpu.memory_space<vmem>>, %arg3: memref<8x72xbf16, #tpu.memory_space<vmem>>, %arg4: memref<8x1xf32, #tpu.memory_space<vmem>>, %arg5: memref<8x1xf32, #tpu.memory_space<vmem>>, %arg6: memref<8x72xbf16, #tpu.memory_space<vmem>>, %arg7: memref<8x1xf32, #tpu.memory_space<vmem>>, %arg8: memref<8x1xf32, #tpu.memory_space<vmem>>, %arg9: memref<1x1086xf32, #tpu.memory_space<vmem>>, %arg10: memref<1x12x1088xf32, #tpu.memory_space<vmem>>, %arg11: memref<72x1086xbf16, #tpu.memory_space<vmem>>) attributes {dimension_semantics = [#tpu.dimension_semantics<parallel>], iteration_bounds = array<i64: 2>, scalar_prefetch = 0 : i64, scratch_operands = 1 : i64, tpu.core_type = #tpu.core_type<tc>, window_params = [{transform_indices = @transform_0, window_bounds = array<i64: 1, 8, 256>}, {pipeline_mode = #tpu.pipeline_mode<synchronous>, transform_indices = @transform_1, window_bounds = array<i64: 256, 1156>}, {pipeline_mode = #tpu.pipeline_mode<synchronous>, transform_indices = @transform_2, window_bounds = array<i64: 8, 72>}, {pipeline_mode = #tpu.pipeline_mode<synchronous>, transform_indices = @transform_3, window_bounds = array<i64: 8, 1>}, {pipeline_mode = #tpu.pipeline_mode<synchronous>, transform_indices = @transform_4, window_bounds = array<i64: 8, 1>}, {pipeline_mode = #tpu.pipeline_mode<synchronous>, transform_indices = @transform_5, window_bounds = array<i64: 8, 72>}, {pipeline_mode = #tpu.pipeline_mode<synchronous>, transform_indices = @transform_6, window_bounds = array<i64: 8, 1>}, {pipeline_mode = #tpu.pipeline_mode<synchronous>, transform_indices = @transform_7, window_bounds = array<i64: 8, 1>}, {pipeline_mode = #tpu.pipeline_mode<synchronous>, transform_indices = @transform_8, window_bounds = array<i64: 1, 1086>}, {transform_indices = @transform_9, window_bounds = array<i64: 1, 12, 1088>}]} {
    %c0 = arith.constant 0 : index
    %c0_0 = arith.constant 0 : index
    %c0_1 = arith.constant 0 : index
    %0 = vector.load %arg1[%c0, %c0_0, %c0_1] : memref<1x8x256xf32, #tpu.memory_space<vmem>>, vector<1x8x256xf32>
    %1 = vector.shape_cast %0 : vector<1x8x256xf32> to vector<8x256xf32>
    %c0_2 = arith.constant 0 : index
    %c0_3 = arith.constant 0 : index
    %2 = vector.load %arg2[%c0_2, %c0_3] : memref<256x1156xf32, #tpu.memory_space<vmem>>, vector<256x1156xf32>
    %cst = arith.constant dense<0.000000e+00> : vector<8x1156xf32>
    %3 = tpu.matmul %1, %2, %cst {dimension_numbers = #tpu.dot_dimension_numbers<[1], [0], [0], [1], [0, 0, 1, 1], [], []>} : vector<8x256xf32>, vector<256x1156xf32>, vector<8x1156xf32> -> vector<8x1156xf32>
    %4 = vector.extract_strided_slice %3 {offsets = [0, 35], sizes = [4, 1088], strides = [1, 1]} : vector<8x1156xf32> to vector<4x1088xf32>
    %c0_4 = arith.constant 0 : index
    %c0_5 = arith.constant 0 : index
    %c0_6 = arith.constant 0 : index
    %5 = vector.load %arg10[%c0_4, %c0_5, %c0_6] : memref<1x12x1088xf32, #tpu.memory_space<vmem>>, vector<1x4x1088xf32>
    %6 = vector.shape_cast %5 : vector<1x4x1088xf32> to vector<4x1088xf32>
    %7 = vector.shape_cast %4 : vector<4x1088xf32> to vector<1x4x1088xf32>
    tpu.vector_store %arg10[%c0_4, %c0_5, %c0_6], %7 {strides = array<i32>} : memref<1x12x1088xf32, #tpu.memory_space<vmem>>, vector<1x4x1088xf32>,
    %8 = arith.truncf %3 : vector<8x1156xf32> to vector<8x1156xbf16>
    %9 = vector.extract_strided_slice %8 {offsets = [0, 0], sizes = [8, 1086], strides = [1, 1]} : vector<8x1156xbf16> to vector<8x1086xbf16>
    %c0_7 = arith.constant 0 : index
    %c0_8 = arith.constant 0 : index
    %10 = vector.load %arg11[%c0_7, %c0_8] : memref<72x1086xbf16, #tpu.memory_space<vmem>>, vector<8x1086xbf16>
    tpu.vector_store %arg11[%c0_7, %c0_8], %9 {strides = array<i32>} : memref<72x1086xbf16, #tpu.memory_space<vmem>>, vector<8x1086xbf16>,
    %11 = vector.extract_strided_slice %8 {offsets = [0, 1], sizes = [8, 1086], strides = [1, 1]} : vector<8x1156xbf16> to vector<8x1086xbf16>
    %c8 = arith.constant 8 : index
    %c0_9 = arith.constant 0 : index
    %12 = vector.load %arg11[%c8, %c0_9] : memref<72x1086xbf16, #tpu.memory_space<vmem>>, vector<8x1086xbf16>
    tpu.vector_store %arg11[%c8, %c0_9], %11 {strides = array<i32>} : memref<72x1086xbf16, #tpu.memory_space<vmem>>, vector<8x1086xbf16>,
    %13 = vector.extract_strided_slice %8 {offsets = [0, 2], sizes = [8, 1086], strides = [1, 1]} : vector<8x1156xbf16> to vector<8x1086xbf16>
    %c16 = arith.constant 16 : index
    %c0_10 = arith.constant 0 : index
    %14 = vector.load %arg11[%c16, %c0_10] : memref<72x1086xbf16, #tpu.memory_space<vmem>>, vector<8x1086xbf16>
    tpu.vector_store %arg11[%c16, %c0_10], %13 {strides = array<i32>} : memref<72x1086xbf16, #tpu.memory_space<vmem>>, vector<8x1086xbf16>,
    %15 = vector.extract_strided_slice %8 {offsets = [0, 34], sizes = [8, 1086], strides = [1, 1]} : vector<8x1156xbf16> to vector<8x1086xbf16>
    %c24 = arith.constant 24 : index
    %c0_11 = arith.constant 0 : index
    %16 = vector.load %arg11[%c24, %c0_11] : memref<72x1086xbf16, #tpu.memory_space<vmem>>, vector<8x1086xbf16>
    tpu.vector_store %arg11[%c24, %c0_11], %15 {strides = array<i32>} : memref<72x1086xbf16, #tpu.memory_space<vmem>>, vector<8x1086xbf16>,
    %17 = vector.extract_strided_slice %8 {offsets = [0, 35], sizes = [8, 1086], strides = [1, 1]} : vector<8x1156xbf16> to vector<8x1086xbf16>
    %c32 = arith.constant 32 : index
    %c0_12 = arith.constant 0 : index
    %18 = vector.load %arg11[%c32, %c0_12] : memref<72x1086xbf16, #tpu.memory_space<vmem>>, vector<8x1086xbf16>
    tpu.vector_store %arg11[%c32, %c0_12], %17 {strides = array<i32>} : memref<72x1086xbf16, #tpu.memory_space<vmem>>, vector<8x1086xbf16>,
    %19 = vector.extract_strided_slice %8 {offsets = [0, 36], sizes = [8, 1086], strides = [1, 1]} : vector<8x1156xbf16> to vector<8x1086xbf16>
    %c40 = arith.constant 40 : index
    %c0_13 = arith.constant 0 : index
    %20 = vector.load %arg11[%c40, %c0_13] : memref<72x1086xbf16, #tpu.memory_space<vmem>>, vector<8x1086xbf16>
    tpu.vector_store %arg11[%c40, %c0_13], %19 {strides = array<i32>} : memref<72x1086xbf16, #tpu.memory_space<vmem>>, vector<8x1086xbf16>,
    %21 = vector.extract_strided_slice %8 {offsets = [0, 68], sizes = [8, 1086], strides = [1, 1]} : vector<8x1156xbf16> to vector<8x1086xbf16>
    %c48 = arith.constant 48 : index
    %c0_14 = arith.constant 0 : index
    %22 = vector.load %arg11[%c48, %c0_14] : memref<72x1086xbf16, #tpu.memory_space<vmem>>, vector<8x1086xbf16>
    tpu.vector_store %arg11[%c48, %c0_14], %21 {strides = array<i32>} : memref<72x1086xbf16, #tpu.memory_space<vmem>>, vector<8x1086xbf16>,
    %23 = vector.extract_strided_slice %8 {offsets = [0, 69], sizes = [8, 1086], strides = [1, 1]} : vector<8x1156xbf16> to vector<8x1086xbf16>
    %c56 = arith.constant 56 : index
    %c0_15 = arith.constant 0 : index
    %24 = vector.load %arg11[%c56, %c0_15] : memref<72x1086xbf16, #tpu.memory_space<vmem>>, vector<8x1086xbf16>
    tpu.vector_store %arg11[%c56, %c0_15], %23 {strides = array<i32>} : memref<72x1086xbf16, #tpu.memory_space<vmem>>, vector<8x1086xbf16>,
    %25 = vector.extract_strided_slice %8 {offsets = [0, 70], sizes = [8, 1086], strides = [1, 1]} : vector<8x1156xbf16> to vector<8x1086xbf16>
    %c64 = arith.constant 64 : index
    %c0_16 = arith.constant 0 : index
    %26 = vector.load %arg11[%c64, %c0_16] : memref<72x1086xbf16, #tpu.memory_space<vmem>>, vector<8x1086xbf16>
    tpu.vector_store %arg11[%c64, %c0_16], %25 {strides = array<i32>} : memref<72x1086xbf16, #tpu.memory_space<vmem>>, vector<8x1086xbf16>,
    %c0_17 = arith.constant 0 : index
    %c0_18 = arith.constant 0 : index
    %27 = vector.load %arg3[%c0_17, %c0_18] : memref<8x72xbf16, #tpu.memory_space<vmem>>, vector<8x72xbf16>
    %c0_19 = arith.constant 0 : index
    %c0_20 = arith.constant 0 : index
    %28 = vector.load %arg11[%c0_19, %c0_20] : memref<72x1086xbf16, #tpu.memory_space<vmem>>, vector<72x1086xbf16>
    %cst_21 = arith.constant dense<0.000000e+00> : vector<8x1086xf32>
    %29 = tpu.matmul %27, %28, %cst_21 {dimension_numbers = #tpu.dot_dimension_numbers<[1], [0], [0], [1], [0, 0, 1, 1], [], []>} : vector<8x72xbf16>, vector<72x1086xbf16>, vector<8x1086xf32> -> vector<8x1086xf32>
    %c0_22 = arith.constant 0 : index
    %c0_23 = arith.constant 0 : index
    %30 = vector.load %arg4[%c0_22, %c0_23] : memref<8x1xf32, #tpu.memory_space<vmem>>, vector<8x1xf32>
    %31 = vector.broadcast %30 : vector<8x1xf32> to vector<8x1086xf32>
    %32 = arith.mulf %29, %31 : vector<8x1086xf32>
    %c0_24 = arith.constant 0 : index
    %c0_25 = arith.constant 0 : index
    %33 = vector.load %arg5[%c0_24, %c0_25] : memref<8x1xf32, #tpu.memory_space<vmem>>, vector<8x1xf32>
    %34 = vector.broadcast %33 : vector<8x1xf32> to vector<8x1086xf32>
    %35 = arith.addf %32, %34 : vector<8x1086xf32>
    %cst_26 = arith.constant 0.000000e+00 : f32
    %36 = vector.broadcast %cst_26 : f32 to vector<8x1086xf32>
    %37 = arith.maximumf %35, %36 : vector<8x1086xf32>
    %c0_27 = arith.constant 0 : index
    %c0_28 = arith.constant 0 : index
    %38 = vector.load %arg9[%c0_27, %c0_28] : memref<1x1086xf32, #tpu.memory_space<vmem>>, vector<1x1086xf32>
    %39 = vector.broadcast %38 : vector<1x1086xf32> to vector<8x1086xf32>
    %40 = arith.mulf %37, %39 : vector<8x1086xf32>
    %cst_29 = arith.constant 0.000000e+00 : f32
    %41 = vector.broadcast %cst_29 : f32 to vector<8x35xf32>
    %42 = tpu.concatenate %41, %40, %41 in 1 : vector<8x35xf32>, vector<8x1086xf32>, vector<8x35xf32> -> vector<8x1156xf32>
    %43 = arith.truncf %42 : vector<8x1156xf32> to vector<8x1156xbf16>
    %44 = vector.extract_strided_slice %43 {offsets = [0, 0], sizes = [8, 1086], strides = [1, 1]} : vector<8x1156xbf16> to vector<8x1086xbf16>
    %c0_30 = arith.constant 0 : index
    %c0_31 = arith.constant 0 : index
    %45 = vector.load %arg11[%c0_30, %c0_31] : memref<72x1086xbf16, #tpu.memory_space<vmem>>, vector<8x1086xbf16>
    tpu.vector_store %arg11[%c0_30, %c0_31], %44 {strides = array<i32>} : memref<72x1086xbf16, #tpu.memory_space<vmem>>, vector<8x1086xbf16>,
    %46 = vector.extract_strided_slice %43 {offsets = [0, 1], sizes = [8, 1086], strides = [1, 1]} : vector<8x1156xbf16> to vector<8x1086xbf16>
    %c8_32 = arith.constant 8 : index
    %c0_33 = arith.constant 0 : index
    %47 = vector.load %arg11[%c8_32, %c0_33] : memref<72x1086xbf16, #tpu.memory_space<vmem>>, vector<8x1086xbf16>
    tpu.vector_store %arg11[%c8_32, %c0_33], %46 {strides = array<i32>} : memref<72x1086xbf16, #tpu.memory_space<vmem>>, vector<8x1086xbf16>,
    %48 = vector.extract_strided_slice %43 {offsets = [0, 2], sizes = [8, 1086], strides = [1, 1]} : vector<8x1156xbf16> to vector<8x1086xbf16>
    %c16_34 = arith.constant 16 : index
    %c0_35 = arith.constant 0 : index
    %49 = vector.load %arg11[%c16_34, %c0_35] : memref<72x1086xbf16, #tpu.memory_space<vmem>>, vector<8x1086xbf16>
    tpu.vector_store %arg11[%c16_34, %c0_35], %48 {strides = array<i32>} : memref<72x1086xbf16, #tpu.memory_space<vmem>>, vector<8x1086xbf16>,
    %50 = vector.extract_strided_slice %43 {offsets = [0, 34], sizes = [8, 1086], strides = [1, 1]} : vector<8x1156xbf16> to vector<8x1086xbf16>
    %c24_36 = arith.constant 24 : index
    %c0_37 = arith.constant 0 : index
    %51 = vector.load %arg11[%c24_36, %c0_37] : memref<72x1086xbf16, #tpu.memory_space<vmem>>, vector<8x1086xbf16>
    tpu.vector_store %arg11[%c24_36, %c0_37], %50 {strides = array<i32>} : memref<72x1086xbf16, #tpu.memory_space<vmem>>, vector<8x1086xbf16>,
    %52 = vector.extract_strided_slice %43 {offsets = [0, 35], sizes = [8, 1086], strides = [1, 1]} : vector<8x1156xbf16> to vector<8x1086xbf16>
    %c32_38 = arith.constant 32 : index
    %c0_39 = arith.constant 0 : index
    %53 = vector.load %arg11[%c32_38, %c0_39] : memref<72x1086xbf16, #tpu.memory_space<vmem>>, vector<8x1086xbf16>
    tpu.vector_store %arg11[%c32_38, %c0_39], %52 {strides = array<i32>} : memref<72x1086xbf16, #tpu.memory_space<vmem>>, vector<8x1086xbf16>,
    %54 = vector.extract_strided_slice %43 {offsets = [0, 36], sizes = [8, 1086], strides = [1, 1]} : vector<8x1156xbf16> to vector<8x1086xbf16>
    %c40_40 = arith.constant 40 : index
    %c0_41 = arith.constant 0 : index
    %55 = vector.load %arg11[%c40_40, %c0_41] : memref<72x1086xbf16, #tpu.memory_space<vmem>>, vector<8x1086xbf16>
    tpu.vector_store %arg11[%c40_40, %c0_41], %54 {strides = array<i32>} : memref<72x1086xbf16, #tpu.memory_space<vmem>>, vector<8x1086xbf16>,
    %56 = vector.extract_strided_slice %43 {offsets = [0, 68], sizes = [8, 1086], strides = [1, 1]} : vector<8x1156xbf16> to vector<8x1086xbf16>
    %c48_42 = arith.constant 48 : index
    %c0_43 = arith.constant 0 : index
    %57 = vector.load %arg11[%c48_42, %c0_43] : memref<72x1086xbf16, #tpu.memory_space<vmem>>, vector<8x1086xbf16>
    tpu.vector_store %arg11[%c48_42, %c0_43], %56 {strides = array<i32>} : memref<72x1086xbf16, #tpu.memory_space<vmem>>, vector<8x1086xbf16>,
    %58 = vector.extract_strided_slice %43 {offsets = [0, 69], sizes = [8, 1086], strides = [1, 1]} : vector<8x1156xbf16> to vector<8x1086xbf16>
    %c56_44 = arith.constant 56 : index
    %c0_45 = arith.constant 0 : index
    %59 = vector.load %arg11[%c56_44, %c0_45] : memref<72x1086xbf16, #tpu.memory_space<vmem>>, vector<8x1086xbf16>
    tpu.vector_store %arg11[%c56_44, %c0_45], %58 {strides = array<i32>} : memref<72x1086xbf16, #tpu.memory_space<vmem>>, vector<8x1086xbf16>,
    %60 = vector.extract_strided_slice %43 {offsets = [0, 70], sizes = [8, 1086], strides = [1, 1]} : vector<8x1156xbf16> to vector<8x1086xbf16>
    %c64_46 = arith.constant 64 : index
    %c0_47 = arith.constant 0 : index
    %61 = vector.load %arg11[%c64_46, %c0_47] : memref<72x1086xbf16, #tpu.memory_space<vmem>>, vector<8x1086xbf16>
    tpu.vector_store %arg11[%c64_46, %c0_47], %60 {strides = array<i32>} : memref<72x1086xbf16, #tpu.memory_space<vmem>>, vector<8x1086xbf16>,
    %c0_48 = arith.constant 0 : index
    %c0_49 = arith.constant 0 : index
    %62 = vector.load %arg6[%c0_48, %c0_49] : memref<8x72xbf16, #tpu.memory_space<vmem>>, vector<8x72xbf16>
    %c0_50 = arith.constant 0 : index
    %c0_51 = arith.constant 0 : index
    %63 = vector.load %arg11[%c0_50, %c0_51] : memref<72x1086xbf16, #tpu.memory_space<vmem>>, vector<72x1086xbf16>
    %cst_52 = arith.constant dense<0.000000e+00> : vector<8x1086xf32>
    %64 = tpu.matmul %62, %63, %cst_52 {dimension_numbers = #tpu.dot_dimension_numbers<[1], [0], [0], [1], [0, 0, 1, 1], [], []>} : vector<8x72xbf16>, vector<72x1086xbf16>, vector<8x1086xf32> -> vector<8x1086xf32>
    %c0_53 = arith.constant 0 : index
    %c0_54 = arith.constant 0 : index
    %65 = vector.load %arg7[%c0_53, %c0_54] : memref<8x1xf32, #tpu.memory_space<vmem>>, vector<8x1xf32>
    %66 = vector.broadcast %65 : vector<8x1xf32> to vector<8x1086xf32>
    %67 = arith.mulf %64, %66 : vector<8x1086xf32>
    %c0_55 = arith.constant 0 : index
    %c0_56 = arith.constant 0 : index
    %68 = vector.load %arg8[%c0_55, %c0_56] : memref<8x1xf32, #tpu.memory_space<vmem>>, vector<8x1xf32>
    %69 = vector.broadcast %68 : vector<8x1xf32> to vector<8x1086xf32>
    %70 = arith.addf %67, %69 : vector<8x1086xf32>
    %cst_57 = arith.constant 0.000000e+00 : f32
    %71 = vector.broadcast %cst_57 : f32 to vector<8x1086xf32>
    %72 = arith.maximumf %70, %71 : vector<8x1086xf32>
    %c0_58 = arith.constant 0 : index
    %c4 = arith.constant 4 : index
    %c0_59 = arith.constant 0 : index
    %73 = vector.load %arg10[%c0_58, %c4, %c0_59] : memref<1x12x1088xf32, #tpu.memory_space<vmem>>, vector<1x8x1086xf32>
    %74 = vector.shape_cast %73 : vector<1x8x1086xf32> to vector<8x1086xf32>
    %75 = vector.shape_cast %72 : vector<8x1086xf32> to vector<1x8x1086xf32>
    tpu.vector_store %arg10[%c0_58, %c4, %c0_59], %75 {strides = array<i32>} : memref<1x12x1088xf32, #tpu.memory_space<vmem>>, vector<1x8x1086xf32>,
    return
  }
  func.func @transform_0(%arg0: i32) -> (i32, i32, i32) {
    %c0_i32 = arith.constant 0 : i32
    %c0_i32_0 = arith.constant 0 : i32
    %c0_i32_1 = arith.constant 0 : i32
    return %arg0, %c0_i32, %c0_i32_0 : i32, i32, i32
  }
  func.func @transform_1(%arg0: i32) -> (i32, i32) {
    %c0_i32 = arith.constant 0 : i32
    %c0_i32_0 = arith.constant 0 : i32
    %c0_i32_1 = arith.constant 0 : i32
    return %c0_i32, %c0_i32_0 : i32, i32
  }
  func.func @transform_2(%arg0: i32) -> (i32, i32) {
    %c0_i32 = arith.constant 0 : i32
    %c0_i32_0 = arith.constant 0 : i32
    %c0_i32_1 = arith.constant 0 : i32
    return %c0_i32, %c0_i32_0 : i32, i32
  }
  func.func @transform_3(%arg0: i32) -> (i32, i32) {
    %c0_i32 = arith.constant 0 : i32
    %c0_i32_0 = arith.constant 0 : i32
    %c0_i32_1 = arith.constant 0 : i32
    return %c0_i32, %c0_i32_0 : i32, i32
  }
  func.func @transform_4(%arg0: i32) -> (i32, i32) {
    %c0_i32 = arith.constant 0 : i32
    %c0_i32_0 = arith.constant 0 : i32
    %c0_i32_1 = arith.constant 0 : i32
    return %c0_i32, %c0_i32_0 : i32, i32
  }
  func.func @transform_5(%arg0: i32) -> (i32, i32) {
    %c0_i32 = arith.constant 0 : i32
    %c0_i32_0 = arith.constant 0 : i32
    %c0_i32_1 = arith.constant 0 : i32
    return %c0_i32, %c0_i32_0 : i32, i32
  }
  func.func @transform_6(%arg0: i32) -> (i32, i32) {
    %c0_i32 = arith.constant 0 : i32
    %c0_i32_0 = arith.constant 0 : i32
    %c0_i32_1 = arith.constant 0 : i32
    return %c0_i32, %c0_i32_0 : i32, i32
  }
  func.func @transform_7(%arg0: i32) -> (i32, i32) {
    %c0_i32 = arith.constant 0 : i32
    %c0_i32_0 = arith.constant 0 : i32
    %c0_i32_1 = arith.constant 0 : i32
    return %c0_i32, %c0_i32_0 : i32, i32
  }
  func.func @transform_8(%arg0: i32) -> (i32, i32) {
    %c0_i32 = arith.constant 0 : i32
    %c0_i32_0 = arith.constant 0 : i32
    %c0_i32_1 = arith.constant 0 : i32
    return %c0_i32, %c0_i32_0 : i32, i32
  }
  func.func @transform_9(%arg0: i32) -> (i32, i32, i32) {
    %c0_i32 = arith.constant 0 : i32
    %c0_i32_0 = arith.constant 0 : i32
    %c0_i32_1 = arith.constant 0 : i32
    return %arg0, %c0_i32, %c0_i32_0 : i32, i32, i32
  }
}

</mosaic_0001>

<bundles_post_ra>
// kernel: tpu_custom_call.1
= control target key start
LH: loop header
LB: loop body
LE: loop exit
PB: predicated region body
PF: predicated region fallthrough
CT: control target
= control target key end

     0   :  { %s3271_s30 = smov 0   ;;  %s5097_s0 = inlined_call_operand.vmem [shape: f32[2,8,256], index: 0, kind: input, shape index: {}]   ;;  %s5098_s1 = inlined_call_operand.vmem [shape: f32[256,1156], index: 1, kind: input, shape index: {}]   ;;  %s5099_s2 = inlined_call_operand.vmem [shape: bf16[8,72], index: 2, kind: input, shape index: {}]   ;;  %s5100_s3 = inlined_call_operand.vmem [shape: f32[8,1], index: 3, kind: input, shape index: {}]   ;;  %s5101_s4 = inlined_call_operand.vmem [shape: f32[8,1], index: 4, kind: input, shape index: {}]   ;;  %s5102_s5 = inlined_call_operand.vmem [shape: bf16[8,72], index: 5, kind: input, shape index: {}]   ;;  %s5103_s6 = inlined_call_operand.vmem [shape: f32[8,1], index: 6, kind: input, shape index: {}]   ;;  %s5104_s7 = inlined_call_operand.vmem [shape: f32[8,1], index: 7, kind: input, shape index: {}]   ;;  %s5105_s8 = inlined_call_operand.vmem [shape: f32[1,1086], index: 8, kind: input, shape index: {}]   ;;  %s5106_s9 = inlined_call_operand.vmem [shape: f32[2,12,1088], index: 9, kind: output, shape index: {}]  }
   0x1 LB: > { %s2963_s10 = sadd.s32 4294967295, %s3206_s30   ;;  %p2967_p0 = scmp.ge.s32.totalorder %s3206_s30, 1  ;;  %s3206_s30 = sphi %s3271_s30, %s19_s30  }
   0x2   : > { %p287_p1 = scmp.lt.s32.totalorder %s3206_s30, 3 }
   0x4   : > { %p288_p2 = pnand %p2967_p0, %p287_p1 }
   0x5   : > { %p3560_p3 = scmp.lt.s32.totalorder (!%p288_p2), %s2963_s10, 1  ;;  %s3209_s26 = smov (!%p288_p2), 58  }
   0x6   : > { %291 = sbr.rel (%p288_p2) target bundleno = 1233 (0x4d1), region = 56  ;;  %s3210_s12 = smov (!%p288_p2), 59  }
   0x7   : > { %s3211_s13 = smov (!%p288_p2), 93   ;;  %s3212_s14 = smov (!%p288_p2), 92  }
   0x8   : > { %s3213_s15 = smov (!%p288_p2), 126   ;;  %s3214_s16 = smov (!%p288_p2), 94  }
   0x9   : > { %s3215_s18 = smov (!%p288_p2), 127   ;;  %s3219_s28 = smov (!%p288_p2), 35  }
   0xb   : > { %v487_v0 = vld [vmem:[%s5098_s1 + $0x4b8] sm:$0xff]  ;;  %v486_v1 = vld [vmem:[%s5098_s1 + $0x4b0] sm:$0xff]  ;;  %v477_v2 = vld [vmem:[%s5098_s1 + $0x468] sm:$0xff]  ;;  %s5109_s10 = smov (!%p3560_p3, %s2963_s10), 1  ;;  %vm1125_vm0 = vcmask 1043456   ;;  %vm1370_vm1 = vcmask 474112  }
   0xc   : > { %656 = vmatprep.subr.mxu0 %v487_v0  ;;  %v476_v3 = vld [vmem:[%s5098_s1 + $0x460] sm:$0xff]  ;;  %v489_v4 = vld [vmem:[%s5098_s1 + $0x4c8] sm:$0xff]  ;;  %v467_v5 = vld [vmem:[%s5098_s1 + $0x418] sm:$0xff]  ;;  %s3094_s21 = sshll.u32 %s5109_s10, 4  ;;  %vm1300_vm2 = vcmask 490496   ;;  %vm1335_vm3 = vcmask 482304  }
   0xd   : > { %657 = vmatpush1.msra.mxu0 %v486_v1  ;;  %727 = vmatprep.subr.mxu1 %v489_v4  ;;  %v488_v6 = vld [vmem:[%s5098_s1 + $0x4c0] sm:$0xff]  ;;  %v466_v7 = vld [vmem:[%s5098_s1 + $0x410] sm:$0xff]  ;;  %v479_v8 = vld [vmem:[%s5098_s1 + $0x478] sm:$0xff]  ;;  %s327_s17 = scalar_lea.vmem %s5097_s0, %s3094_s21  ;;  %vm1108_vm4 = vcmask 502784   ;;  %vm1038_vm5 = vcmask 760832   ;;  %vm1263_vm6 = vcmask 752640  }
   0xe   : > { %658 = vmatprep.subr.mxu0 %v477_v2  ;;  %728 = vmatpush1.msra.mxu1 %v488_v6  ;;  %v478_v9 = vld [vmem:[%s5098_s1 + $0x470] sm:$0xff]  ;;  %v457_v10 = vld [vmem:[%s5098_s1 + $0x3c8] sm:$0xff]  ;;  %v456_v12 = vld [vmem:[%s5098_s1 + $0x3c0] sm:$0xff]  ;;  %vm1161_vm7 = vcmask 1031168   ;;  %vm1195_vm8 = vcmask 769024   ;;  %vm1127_vm9 = vcmask 1039360  }
   0xf   : > { %659 = vmatpush1.msra.mxu0 %v476_v3  ;;  %729 = vmatprep.subr.mxu1 %v479_v8  ;;  %v469_v11 = vld [vmem:[%s5098_s1 + $0x428] sm:$0xff]  ;;  %v468_v13 = vld [vmem:[%s5098_s1 + $0x420] sm:$0xff]  ;;  %v459_v14 = vld [vmem:[%s5098_s1 + $0x3d8] sm:$0xff]  ;;  %vm3218_vm10 = vmmov 0   ;;  %vm1642_vm11 = vcmask 588800   ;;  %vm2002_vm12 = vcmask 285696  }
  0x10   : > { %660 = vmatprep.subr.mxu0 %v467_v5  ;;  %730 = vmatpush1.msra.mxu1 %v478_v9  ;;  %v447_v15 = vld [vmem:[%s5098_s1 + $0x378] sm:$0xff]  ;;  %v458_v16 = vld [vmem:[%s5098_s1 + $0x3d0] sm:$0xff]  ;;  %v449_v18 = vld [vmem:[%s5098_s1 + $0x388] sm:$0xff]  ;;  %vm2021_vm13 = vcmask 793600   ;;  %vm1064_vm14 = vcmask 519168   ;;  %vm2897_vm15 = vcmask 506884  }
  0x11   : > { %661 = vmatpush1.msra.mxu0 %v466_v7  ;;  %731 = vmatprep.subr.mxu1 %v469_v11  ;;  %v446_v17 = vld [vmem:[%s5098_s1 + $0x370] sm:$0xff]  ;;  %v437_v19 = vld [vmem:[%s5098_s1 + $0x328] sm:$0xff]  ;;  %v448_v20 = vld [vmem:[%s5098_s1 + $0x380] sm:$0xff] }
  0x12   : > { %662 = vmatprep.subr.mxu0 %v457_v10  ;;  %732 = vmatpush1.msra.mxu1 %v468_v13  ;;  %v436_v21 = vld [vmem:[%s5098_s1 + $0x320] sm:$0xff]  ;;  %v439_v22 = vld [vmem:[%s5098_s1 + $0x338] sm:$0xff]  ;;  %v438_v24 = vld [vmem:[%s5098_s1 + $0x330] sm:$0xff] }
  0x13   : > { %663 = vmatpush1.msra.mxu0 %v456_v12  ;;  %733 = vmatprep.subr.mxu1 %v459_v14  ;;  %v427_v23 = vld [vmem:[%s5098_s1 + $0x2d8] sm:$0xff]  ;;  %v426_v25 = vld [vmem:[%s5098_s1 + $0x2d0] sm:$0xff]  ;;  %v429_v26 = vld [vmem:[%s5098_s1 + $0x2e8] sm:$0xff] }
  0x14   : > { %664 = vmatprep.subr.mxu0 %v447_v15  ;;  %734 = vmatpush1.msra.mxu1 %v458_v16  ;;  %v417_v27 = vld [vmem:[%s5098_s1 + $0x288] sm:$0xff]  ;;  %v428_v28 = vld [vmem:[%s5098_s1 + $0x2e0] sm:$0xff]  ;;  %v419_v30 = vld [vmem:[%s5098_s1 + $0x298] sm:$0xff] }
  0x15   : > { %665 = vmatpush1.msra.mxu0 %v446_v17  ;;  %735 = vmatprep.subr.mxu1 %v449_v18  ;;  %v416_v29 = vld [vmem:[%s5098_s1 + $0x280] sm:$0xff]  ;;  %v407_v31 = vld [vmem:[%s5098_s1 + $0x238] sm:$0xff]  ;;  %v418_v32 = vld [vmem:[%s5098_s1 + $0x290] sm:$0xff] }
  0x16   : > { %666 = vmatprep.subr.mxu0 %v437_v19  ;;  %736 = vmatpush1.msra.mxu1 %v448_v20  ;;  %v406_v33 = vld [vmem:[%s5098_s1 + $0x230] sm:$0xff]  ;;  %v409_v34 = vld [vmem:[%s5098_s1 + $0x248] sm:$0xff]  ;;  %v408_v36 = vld [vmem:[%s5098_s1 + $0x240] sm:$0xff] }
  0x17   : > { %667 = vmatpush1.msra.mxu0 %v436_v21  ;;  %737 = vmatprep.subr.mxu1 %v439_v22  ;;  %v397_v35 = vld [vmem:[%s5098_s1 + $0x1e8] sm:$0xff]  ;;  %v396_v37 = vld [vmem:[%s5098_s1 + $0x1e0] sm:$0xff]  ;;  %v399_v38 = vld [vmem:[%s5098_s1 + $0x1f8] sm:$0xff] }
  0x18   : > { %668 = vmatprep.subr.mxu0 %v427_v23  ;;  %738 = vmatpush1.msra.mxu1 %v438_v24  ;;  %v387_v39 = vld [vmem:[%s5098_s1 + $0x198] sm:$0xff]  ;;  %v398_v40 = vld [vmem:[%s5098_s1 + $0x1f0] sm:$0xff]  ;;  %v389_v42 = vld [vmem:[%s5098_s1 + $0x1a8] sm:$0xff] }
  0x19   : > { %669 = vmatpush1.msra.mxu0 %v426_v25  ;;  %739 = vmatprep.subr.mxu1 %v429_v26  ;;  %v386_v41 = vld [vmem:[%s5098_s1 + $0x190] sm:$0xff]  ;;  %v377_v43 = vld [vmem:[%s5098_s1 + $0x148] sm:$0xff]  ;;  %v388_v44 = vld [vmem:[%s5098_s1 + $0x1a0] sm:$0xff] }
  0x1a   : > { %670 = vmatprep.subr.mxu0 %v417_v27  ;;  %740 = vmatpush1.msra.mxu1 %v428_v28  ;;  %v376_v45 = vld [vmem:[%s5098_s1 + $0x140] sm:$0xff]  ;;  %v379_v46 = vld [vmem:[%s5098_s1 + $0x158] sm:$0xff]  ;;  %v378_v48 = vld [vmem:[%s5098_s1 + $0x150] sm:$0xff] }
  0x1b   : > { %671 = vmatpush1.msra.mxu0 %v416_v29  ;;  %741 = vmatprep.subr.mxu1 %v419_v30  ;;  %v367_v47 = vld [vmem:[%s5098_s1 + $0xf8] sm:$0xff]  ;;  %v366_v49 = vld [vmem:[%s5098_s1 + $0xf0] sm:$0xff]  ;;  %v369_v50 = vld [vmem:[%s5098_s1 + $0x108] sm:$0xff] }
  0x1c   : > { %672 = vmatprep.subr.mxu0 %v407_v31  ;;  %742 = vmatpush1.msra.mxu1 %v418_v32  ;;  %v357_v51 = vld [vmem:[%s5098_s1 + $0xa8] sm:$0xff]  ;;  %v368_v52 = vld [vmem:[%s5098_s1 + $0x100] sm:$0xff]  ;;  %v359_v54 = vld [vmem:[%s5098_s1 + $0xb8] sm:$0xff] }
  0x1d   : > { %673 = vmatpush1.msra.mxu0 %v406_v33  ;;  %743 = vmatprep.subr.mxu1 %v409_v34  ;;  %v356_v53 = vld [vmem:[%s5098_s1 + $0xa0] sm:$0xff]  ;;  %v347_v55 = vld [vmem:[%s5098_s1 + $0x58] sm:$0xff]  ;;  %v358_v56 = vld [vmem:[%s5098_s1 + $0xb0] sm:$0xff] }
  0x1e   : > { %674 = vmatprep.subr.mxu0 %v397_v35  ;;  %744 = vmatpush1.msra.mxu1 %v408_v36  ;;  %v346_v57 = vld [vmem:[%s5098_s1 + $0x50] sm:$0xff]  ;;  %v349_v58 = vld [vmem:[%s5098_s1 + $0x68] sm:$0xff]  ;;  %v348_v60 = vld [vmem:[%s5098_s1 + $0x60] sm:$0xff] }
  0x1f   : > { %675 = vmatpush1.msra.mxu0 %v396_v37  ;;  %745 = vmatprep.subr.mxu1 %v399_v38  ;;  %v337_v59 = vld [vmem:[%s5098_s1 + $0x8] sm:$0xff]  ;;  %v336_v61 = vld [vmem:[%s5098_s1] sm:$0xff]  ;;  %v339_v62 = vld [vmem:[%s5098_s1 + $0x18] sm:$0xff] }
  0x20   : > { %676 = vmatprep.subr.mxu0 %v387_v39  ;;  %746 = vmatpush1.msra.mxu1 %v398_v40  ;;  %v647_v63 = vld [vmem:[%s5098_s1 + $0x9b8] sm:$0xff]  ;;  %v338_v0 = vld [vmem:[%s5098_s1 + $0x10] sm:$0xff]  ;;  %v649_v2 = vld [vmem:[%s5098_s1 + $0x9c8] sm:$0xff] }
  0x21   : > { %677 = vmatpush1.msra.mxu0 %v386_v41  ;;  %747 = vmatprep.subr.mxu1 %v389_v42  ;;  %v646_v1 = vld [vmem:[%s5098_s1 + $0x9b0] sm:$0xff]  ;;  %v637_v3 = vld [vmem:[%s5098_s1 + $0x968] sm:$0xff]  ;;  %v648_v4 = vld [vmem:[%s5098_s1 + $0x9c0] sm:$0xff] }
  0x22   : > { %678 = vmatprep.subr.mxu0 %v377_v43  ;;  %748 = vmatpush1.msra.mxu1 %v388_v44  ;;  %v636_v5 = vld [vmem:[%s5098_s1 + $0x960] sm:$0xff]  ;;  %v639_v6 = vld [vmem:[%s5098_s1 + $0x978] sm:$0xff]  ;;  %v638_v8 = vld [vmem:[%s5098_s1 + $0x970] sm:$0xff] }
  0x23   : > { %679 = vmatpush1.msra.mxu0 %v376_v45  ;;  %749 = vmatprep.subr.mxu1 %v379_v46  ;;  %v627_v7 = vld [vmem:[%s5098_s1 + $0x918] sm:$0xff]  ;;  %v626_v9 = vld [vmem:[%s5098_s1 + $0x910] sm:$0xff]  ;;  %v629_v10 = vld [vmem:[%s5098_s1 + $0x928] sm:$0xff] }
  0x24   : > { %680 = vmatprep.subr.mxu0 %v367_v47  ;;  %750 = vmatpush1.msra.mxu1 %v378_v48  ;;  %v617_v11 = vld [vmem:[%s5098_s1 + $0x8c8] sm:$0xff]  ;;  %v628_v12 = vld [vmem:[%s5098_s1 + $0x920] sm:$0xff]  ;;  %v619_v14 = vld [vmem:[%s5098_s1 + $0x8d8] sm:$0xff] }
  0x25   : > { %681 = vmatpush1.msra.mxu0 %v366_v49  ;;  %751 = vmatprep.subr.mxu1 %v369_v50  ;;  %v616_v13 = vld [vmem:[%s5098_s1 + $0x8c0] sm:$0xff]  ;;  %v607_v15 = vld [vmem:[%s5098_s1 + $0x878] sm:$0xff]  ;;  %v618_v16 = vld [vmem:[%s5098_s1 + $0x8d0] sm:$0xff] }
  0x26   : > { %682 = vmatprep.subr.mxu0 %v357_v51  ;;  %752 = vmatpush1.msra.mxu1 %v368_v52  ;;  %v606_v17 = vld [vmem:[%s5098_s1 + $0x870] sm:$0xff]  ;;  %v609_v18 = vld [vmem:[%s5098_s1 + $0x888] sm:$0xff]  ;;  %v608_v20 = vld [vmem:[%s5098_s1 + $0x880] sm:$0xff] }
  0x27   : > { %683 = vmatpush1.msra.mxu0 %v356_v53  ;;  %753 = vmatprep.subr.mxu1 %v359_v54  ;;  %v597_v19 = vld [vmem:[%s5098_s1 + $0x828] sm:$0xff]  ;;  %v596_v21 = vld [vmem:[%s5098_s1 + $0x820] sm:$0xff]  ;;  %v599_v22 = vld [vmem:[%s5098_s1 + $0x838] sm:$0xff] }
  0x28   : > { %684 = vmatprep.subr.mxu0 %v347_v55  ;;  %754 = vmatpush1.msra.mxu1 %v358_v56  ;;  %v587_v23 = vld [vmem:[%s5098_s1 + $0x7d8] sm:$0xff]  ;;  %v598_v24 = vld [vmem:[%s5098_s1 + $0x830] sm:$0xff]  ;;  %v589_v26 = vld [vmem:[%s5098_s1 + $0x7e8] sm:$0xff] }
  0x29   : > { %685 = vmatpush1.msra.mxu0 %v346_v57  ;;  %755 = vmatprep.subr.mxu1 %v349_v58  ;;  %v586_v25 = vld [vmem:[%s5098_s1 + $0x7d0] sm:$0xff]  ;;  %v577_v27 = vld [vmem:[%s5098_s1 + $0x788] sm:$0xff]  ;;  %v588_v28 = vld [vmem:[%s5098_s1 + $0x7e0] sm:$0xff] }
  0x2a   : > { %686 = vmatprep.subr.mxu0 %v337_v59  ;;  %756 = vmatpush1.msra.mxu1 %v348_v60  ;;  %v576_v29 = vld [vmem:[%s5098_s1 + $0x780] sm:$0xff]  ;;  %v579_v30 = vld [vmem:[%s5098_s1 + $0x798] sm:$0xff]  ;;  %v578_v32 = vld [vmem:[%s5098_s1 + $0x790] sm:$0xff] }
  0x2b   : > { %687 = vmatpush1.msra.mxu0 %v336_v61  ;;  %757 = vmatprep.subr.mxu1 %v339_v62  ;;  %v567_v31 = vld [vmem:[%s5098_s1 + $0x738] sm:$0xff]  ;;  %v566_v33 = vld [vmem:[%s5098_s1 + $0x730] sm:$0xff]  ;;  %v569_v34 = vld [vmem:[%s5098_s1 + $0x748] sm:$0xff] }
  0x2c   : > { %688 = vmatprep.subr.mxu0 %v647_v63  ;;  %758 = vmatpush1.msra.mxu1 %v338_v0  ;;  %v557_v35 = vld [vmem:[%s5098_s1 + $0x6e8] sm:$0xff]  ;;  %v568_v36 = vld [vmem:[%s5098_s1 + $0x740] sm:$0xff]  ;;  %v559_v38 = vld [vmem:[%s5098_s1 + $0x6f8] sm:$0xff] }
  0x2d   : > { %689 = vmatpush2.msra.mxu0 %v646_v1  ;;  %759 = vmatprep.subr.mxu1 %v649_v2  ;;  %v556_v37 = vld [vmem:[%s5098_s1 + $0x6e0] sm:$0xff]  ;;  %v547_v39 = vld [vmem:[%s5098_s1 + $0x698] sm:$0xff]  ;;  %v558_v40 = vld [vmem:[%s5098_s1 + $0x6f0] sm:$0xff] }
  0x2e   : > { %690 = vmatprep.subr.mxu0 %v637_v3  ;;  %760 = vmatpush2.msra.mxu1 %v648_v4  ;;  %v546_v41 = vld [vmem:[%s5098_s1 + $0x690] sm:$0xff]  ;;  %v549_v42 = vld [vmem:[%s5098_s1 + $0x6a8] sm:$0xff]  ;;  %v548_v44 = vld [vmem:[%s5098_s1 + $0x6a0] sm:$0xff] }
  0x2f   : > { %691 = vmatpush2.msra.mxu0 %v636_v5  ;;  %761 = vmatprep.subr.mxu1 %v639_v6  ;;  %v537_v43 = vld [vmem:[%s5098_s1 + $0x648] sm:$0xff]  ;;  %v536_v45 = vld [vmem:[%s5098_s1 + $0x640] sm:$0xff]  ;;  %v539_v46 = vld [vmem:[%s5098_s1 + $0x658] sm:$0xff] }
  0x30   : > { %692 = vmatprep.subr.mxu0 %v627_v7  ;;  %762 = vmatpush2.msra.mxu1 %v638_v8  ;;  %v527_v47 = vld [vmem:[%s5098_s1 + $0x5f8] sm:$0xff]  ;;  %v538_v48 = vld [vmem:[%s5098_s1 + $0x650] sm:$0xff]  ;;  %v529_v50 = vld [vmem:[%s5098_s1 + $0x608] sm:$0xff] }
  0x31   : > { %693 = vmatpush2.msra.mxu0 %v626_v9  ;;  %763 = vmatprep.subr.mxu1 %v629_v10  ;;  %v526_v49 = vld [vmem:[%s5098_s1 + $0x5f0] sm:$0xff]  ;;  %v517_v51 = vld [vmem:[%s5098_s1 + $0x5a8] sm:$0xff]  ;;  %v528_v52 = vld [vmem:[%s5098_s1 + $0x600] sm:$0xff] }
  0x32   : > { %694 = vmatprep.subr.mxu0 %v617_v11  ;;  %764 = vmatpush2.msra.mxu1 %v628_v12  ;;  %v516_v53 = vld [vmem:[%s5098_s1 + $0x5a0] sm:$0xff]  ;;  %v519_v54 = vld [vmem:[%s5098_s1 + $0x5b8] sm:$0xff]  ;;  %v3655_v56 = vld [vmem:[%s327_s17 + $0x8] sm:$0xff] }
  0x33   : > { %695 = vmatpush2.msra.mxu0 %v616_v13  ;;  %765 = vmatprep.subr.mxu1 %v619_v14  ;;  %v507_v55 = vld [vmem:[%s5098_s1 + $0x558] sm:$0xff]  ;;  %v506_v57 = vld [vmem:[%s5098_s1 + $0x550] sm:$0xff]  ;;  %v497_v59 = vld [vmem:[%s5098_s1 + $0x508] sm:$0xff] }
  0x34   : > { %696 = vmatprep.subr.mxu0 %v607_v15  ;;  %766 = vmatpush2.msra.mxu1 %v618_v16  ;;  %v518_v58 = vld [vmem:[%s5098_s1 + $0x5b0] sm:$0xff]  ;;  %v509_v60 = vld [vmem:[%s5098_s1 + $0x568] sm:$0xff]  ;;  %v496_v61 = vld [vmem:[%s5098_s1 + $0x500] sm:$0xff] }
  0x35   : > { %697 = vmatpush2.msra.mxu0 %v606_v17  ;;  %767 = vmatprep.subr.mxu1 %v609_v18  ;;  %v508_v62 = vld [vmem:[%s5098_s1 + $0x560] sm:$0xff]  ;;  %v491_v0 = vld [vmem:[%s5098_s1 + $0x4d8] sm:$0xff]  ;;  %v490_v1 = vld [vmem:[%s5098_s1 + $0x4d0] sm:$0xff] }
  0x36   : > { %698 = vmatprep.subr.mxu0 %v597_v19  ;;  %768 = vmatpush2.msra.mxu1 %v608_v20  ;;  %v3676_v63 = vld [vmem:[%s327_s17] sm:$0xff]  ;;  %v499_v2 = vld [vmem:[%s5098_s1 + $0x518] sm:$0xff]  ;;  %v481_v3 = vld [vmem:[%s5098_s1 + $0x488] sm:$0xff]  ;;  %s3208_s17 = smov 60  }
  0x37   : > { %699 = vmatpush2.msra.mxu0 %v596_v21  ;;  %769 = vmatprep.subr.mxu1 %v599_v22  ;;  %v498_v4 = vld [vmem:[%s5098_s1 + $0x510] sm:$0xff]  ;;  %v480_v5 = vld [vmem:[%s5098_s1 + $0x480] sm:$0xff]  ;;  %v471_v6 = vld [vmem:[%s5098_s1 + $0x438] sm:$0xff] }
  0x38   : > { %700 = vmatprep.subr.mxu0 %v587_v23  ;;  %770 = vmatpush2.msra.mxu1 %v598_v24  ;;  %v470_v7 = vld [vmem:[%s5098_s1 + $0x430] sm:$0xff]  ;;  %v493_v8 = vld [vmem:[%s5098_s1 + $0x4e8] sm:$0xff]  ;;  %v492_v10 = vld [vmem:[%s5098_s1 + $0x4e0] sm:$0xff] }
  0x39   : > { %701 = vmatpush2.msra.mxu0 %v586_v25  ;;  %771 = vmatprep.subr.mxu1 %v589_v26  ;;  %v461_v9 = vld [vmem:[%s5098_s1 + $0x3e8] sm:$0xff]  ;;  %v460_v11 = vld [vmem:[%s5098_s1 + $0x3e0] sm:$0xff]  ;;  %v483_v12 = vld [vmem:[%s5098_s1 + $0x498] sm:$0xff] }
  0x3a   : > { %702 = vmatprep.subr.mxu0 %v577_v27  ;;  %772 = vmatpush2.msra.mxu1 %v588_v28  ;;  %v451_v13 = vld [vmem:[%s5098_s1 + $0x398] sm:$0xff]  ;;  %v482_v14 = vld [vmem:[%s5098_s1 + $0x490] sm:$0xff]  ;;  %v473_v16 = vld [vmem:[%s5098_s1 + $0x448] sm:$0xff] }
  0x3b   : > { %703 = vmatpush2.msra.mxu0 %v576_v29  ;;  %773 = vmatprep.subr.mxu1 %v579_v30  ;;  %v450_v15 = vld [vmem:[%s5098_s1 + $0x390] sm:$0xff]  ;;  %v441_v17 = vld [vmem:[%s5098_s1 + $0x348] sm:$0xff]  ;;  %v472_v18 = vld [vmem:[%s5098_s1 + $0x440] sm:$0xff] }
  0x3c   : > { %704 = vmatprep.subr.mxu0 %v567_v31  ;;  %774 = vmatpush2.msra.mxu1 %v578_v32  ;;  %v440_v19 = vld [vmem:[%s5098_s1 + $0x340] sm:$0xff]  ;;  %v463_v20 = vld [vmem:[%s5098_s1 + $0x3f8] sm:$0xff]  ;;  %v462_v22 = vld [vmem:[%s5098_s1 + $0x3f0] sm:$0xff] }
  0x3d   : > { %705 = vmatpush2.msra.mxu0 %v566_v33  ;;  %775 = vmatprep.subr.mxu1 %v569_v34  ;;  %v431_v21 = vld [vmem:[%s5098_s1 + $0x2f8] sm:$0xff]  ;;  %v430_v23 = vld [vmem:[%s5098_s1 + $0x2f0] sm:$0xff]  ;;  %v453_v24 = vld [vmem:[%s5098_s1 + $0x3a8] sm:$0xff] }
  0x3e   : > { %706 = vmatprep.subr.mxu0 %v557_v35  ;;  %776 = vmatpush2.msra.mxu1 %v568_v36  ;;  %v421_v25 = vld [vmem:[%s5098_s1 + $0x2a8] sm:$0xff]  ;;  %v452_v26 = vld [vmem:[%s5098_s1 + $0x3a0] sm:$0xff]  ;;  %v443_v28 = vld [vmem:[%s5098_s1 + $0x358] sm:$0xff] }
  0x3f   : > { %707 = vmatpush2.msra.mxu0 %v556_v37  ;;  %777 = vmatprep.subr.mxu1 %v559_v38  ;;  %v420_v27 = vld [vmem:[%s5098_s1 + $0x2a0] sm:$0xff]  ;;  %v411_v29 = vld [vmem:[%s5098_s1 + $0x258] sm:$0xff]  ;;  %v442_v30 = vld [vmem:[%s5098_s1 + $0x350] sm:$0xff] }
  0x40   : > { %708 = vmatprep.subr.mxu0 %v547_v39  ;;  %778 = vmatpush2.msra.mxu1 %v558_v40  ;;  %v410_v31 = vld [vmem:[%s5098_s1 + $0x250] sm:$0xff]  ;;  %v433_v32 = vld [vmem:[%s5098_s1 + $0x308] sm:$0xff]  ;;  %v432_v34 = vld [vmem:[%s5098_s1 + $0x300] sm:$0xff] }
  0x41   : > { %709 = vmatpush2.msra.mxu0 %v546_v41  ;;  %779 = vmatprep.subr.mxu1 %v549_v42  ;;  %v401_v33 = vld [vmem:[%s5098_s1 + $0x208] sm:$0xff]  ;;  %v400_v35 = vld [vmem:[%s5098_s1 + $0x200] sm:$0xff]  ;;  %v423_v36 = vld [vmem:[%s5098_s1 + $0x2b8] sm:$0xff] }
  0x42   : > { %710 = vmatprep.subr.mxu0 %v537_v43  ;;  %780 = vmatpush2.msra.mxu1 %v548_v44  ;;  %v391_v37 = vld [vmem:[%s5098_s1 + $0x1b8] sm:$0xff]  ;;  %v422_v38 = vld [vmem:[%s5098_s1 + $0x2b0] sm:$0xff]  ;;  %v413_v40 = vld [vmem:[%s5098_s1 + $0x268] sm:$0xff] }
  0x43   : > { %711 = vmatpush2.msra.mxu0 %v536_v45  ;;  %781 = vmatprep.subr.mxu1 %v539_v46  ;;  %v390_v39 = vld [vmem:[%s5098_s1 + $0x1b0] sm:$0xff]  ;;  %v381_v41 = vld [vmem:[%s5098_s1 + $0x168] sm:$0xff]  ;;  %v412_v42 = vld [vmem:[%s5098_s1 + $0x260] sm:$0xff] }
  0x44   : > { %712 = vmatprep.subr.mxu0 %v527_v47  ;;  %782 = vmatpush2.msra.mxu1 %v538_v48  ;;  %v380_v43 = vld [vmem:[%s5098_s1 + $0x160] sm:$0xff]  ;;  %v403_v44 = vld [vmem:[%s5098_s1 + $0x218] sm:$0xff]  ;;  %v402_v46 = vld [vmem:[%s5098_s1 + $0x210] sm:$0xff] }
  0x45   : > { %713 = vmatpush2.msra.mxu0 %v526_v49  ;;  %783 = vmatprep.subr.mxu1 %v529_v50  ;;  %v371_v45 = vld [vmem:[%s5098_s1 + $0x118] sm:$0xff]  ;;  %v370_v47 = vld [vmem:[%s5098_s1 + $0x110] sm:$0xff]  ;;  %v393_v48 = vld [vmem:[%s5098_s1 + $0x1c8] sm:$0xff] }
  0x46   : > { %714 = vmatprep.subr.mxu0 %v517_v51  ;;  %784 = vmatpush2.msra.mxu1 %v528_v52  ;;  %v361_v49 = vld [vmem:[%s5098_s1 + $0xc8] sm:$0xff]  ;;  %v392_v50 = vld [vmem:[%s5098_s1 + $0x1c0] sm:$0xff]  ;;  %v383_v52 = vld [vmem:[%s5098_s1 + $0x178] sm:$0xff] }
  0x47   : > { %715 = vmatpush2.msra.mxu0 %v516_v53  ;;  %785 = vmatprep.subr.mxu1 %v519_v54  ;;  %v360_v51 = vld [vmem:[%s5098_s1 + $0xc0] sm:$0xff]  ;;  %v351_v53 = vld [vmem:[%s5098_s1 + $0x78] sm:$0xff]  ;;  %v382_v54 = vld [vmem:[%s5098_s1 + $0x170] sm:$0xff] }
  0x48   : > { %716 = vmatprep.subr.mxu0 %v507_v55  ;;  %720 = vmatprep.mubr.f32.mxu0 %v3655_v56  ;;  %v350_v55 = vld [vmem:[%s5098_s1 + $0x70] sm:$0xff] }
  0x49   : > { %717 = vmatpush2.msra.mxu0 %v506_v57  ;;  %786 = vmatpush2.msra.mxu1 %v518_v58  ;;  %v373_v57 = vld [vmem:[%s5098_s1 + $0x128] sm:$0xff] }
  0x4a   : > { %718 = vmatprep.subr.mxu0 %v497_v59  ;;  %787 = vmatprep.subr.mxu1 %v509_v60  ;;  %v341_v58 = vld [vmem:[%s5098_s1 + $0x28] sm:$0xff]  ;;  %v372_v59 = vld [vmem:[%s5098_s1 + $0x120] sm:$0xff] }
  0x4b   : > { %719 = vmatpush2.msra.mxu0 %v496_v61  ;;  %788 = vmatpush2.msra.mxu1 %v508_v62  ;;  %v340_v60 = vld [vmem:[%s5098_s1 + $0x20] sm:$0xff]  ;;  %v363_v61 = vld [vmem:[%s5098_s1 + $0xd8] sm:$0xff] }
  0x4c   : > { %721 = vmatmul.mubr.f32.vlgmr.msra.gmra.mxu0 %v3676_v63  ;;  %798 = vmatprep.subr.mxu0 %v491_v0  ;;  %v651_v62 = vld [vmem:[%s5098_s1 + $0x9d8] sm:$0xff]  ;;  %v362_v0 = vld [vmem:[%s5098_s1 + $0xd0] sm:$0xff] }
  0x4d   : > { %799 = vmatpush1.msra.mxu0 %v490_v1  ;;  %789 = vmatprep.subr.mxu1 %v499_v2  ;;  %v650_v1 = vld [vmem:[%s5098_s1 + $0x9d0] sm:$0xff]  ;;  %v353_v2 = vld [vmem:[%s5098_s1 + $0x88] sm:$0xff] }
  0x4e   : > { %800 = vmatprep.subr.mxu0 %v481_v3  ;;  %790 = vmatpush2.msra.mxu1 %v498_v4  ;;  %v641_v3 = vld [vmem:[%s5098_s1 + $0x988] sm:$0xff]  ;;  %v352_v4 = vld [vmem:[%s5098_s1 + $0x80] sm:$0xff] }
  0x4f   : > { %791 = vmatprep.mubr.f32.mxu1 %v3655_v56  ;;  %801 = vmatpush1.msra.mxu0 %v480_v5  ;;  %v640_v5 = vld [vmem:[%s5098_s1 + $0x980] sm:$0xff] }
  0x50   : > { %792 = vmatmul.mubr.f32.vlgmr.msra.gmra.mxu1 %v3676_v63  ;;  %802 = vmatprep.subr.mxu0 %v471_v6  ;;  %v343_v6 = vld [vmem:[%s5098_s1 + $0x38] sm:$0xff] }
  0x51   : > { %803 = vmatpush1.msra.mxu0 %v470_v7  ;;  %869 = vmatprep.subr.mxu1 %v493_v8  ;;  %v631_v7 = vld [vmem:[%s5098_s1 + $0x938] sm:$0xff]  ;;  %v342_v8 = vld [vmem:[%s5098_s1 + $0x30] sm:$0xff] }
  0x52   : > { %804 = vmatprep.subr.mxu0 %v461_v9  ;;  %870 = vmatpush1.msra.mxu1 %v492_v10  ;;  %v630_v9 = vld [vmem:[%s5098_s1 + $0x930] sm:$0xff]  ;;  %v653_v10 = vld [vmem:[%s5098_s1 + $0x9e8] sm:$0xff] }
  0x53   : > { %805 = vmatpush1.msra.mxu0 %v460_v11  ;;  %871 = vmatprep.subr.mxu1 %v483_v12  ;;  %v621_v11 = vld [vmem:[%s5098_s1 + $0x8e8] sm:$0xff]  ;;  %v652_v12 = vld [vmem:[%s5098_s1 + $0x9e0] sm:$0xff] }
  0x54   : > { %806 = vmatprep.subr.mxu0 %v451_v13  ;;  %872 = vmatpush1.msra.mxu1 %v482_v14  ;;  %v620_v13 = vld [vmem:[%s5098_s1 + $0x8e0] sm:$0xff]  ;;  %v643_v14 = vld [vmem:[%s5098_s1 + $0x998] sm:$0xff] }
  0x55   : > { %807 = vmatpush1.msra.mxu0 %v450_v15  ;;  %873 = vmatprep.subr.mxu1 %v473_v16  ;;  %v611_v15 = vld [vmem:[%s5098_s1 + $0x898] sm:$0xff]  ;;  %v642_v16 = vld [vmem:[%s5098_s1 + $0x990] sm:$0xff] }
  0x56   : > { %808 = vmatprep.subr.mxu0 %v441_v17  ;;  %874 = vmatpush1.msra.mxu1 %v472_v18  ;;  %v610_v17 = vld [vmem:[%s5098_s1 + $0x890] sm:$0xff]  ;;  %v633_v18 = vld [vmem:[%s5098_s1 + $0x948] sm:$0xff] }
  0x57   : > { %809 = vmatpush1.msra.mxu0 %v440_v19  ;;  %875 = vmatprep.subr.mxu1 %v463_v20  ;;  %v601_v19 = vld [vmem:[%s5098_s1 + $0x848] sm:$0xff]  ;;  %v632_v20 = vld [vmem:[%s5098_s1 + $0x940] sm:$0xff] }
  0x58   : > { %810 = vmatprep.subr.mxu0 %v431_v21  ;;  %876 = vmatpush1.msra.mxu1 %v462_v22  ;;  %v600_v21 = vld [vmem:[%s5098_s1 + $0x840] sm:$0xff]  ;;  %v623_v22 = vld [vmem:[%s5098_s1 + $0x8f8] sm:$0xff] }
  0x59   : > { %811 = vmatpush1.msra.mxu0 %v430_v23  ;;  %877 = vmatprep.subr.mxu1 %v453_v24  ;;  %v591_v23 = vld [vmem:[%s5098_s1 + $0x7f8] sm:$0xff]  ;;  %v622_v24 = vld [vmem:[%s5098_s1 + $0x8f0] sm:$0xff] }
  0x5a   : > { %812 = vmatprep.subr.mxu0 %v421_v25  ;;  %878 = vmatpush1.msra.mxu1 %v452_v26  ;;  %v590_v25 = vld [vmem:[%s5098_s1 + $0x7f0] sm:$0xff]  ;;  %v613_v26 = vld [vmem:[%s5098_s1 + $0x8a8] sm:$0xff] }
  0x5b   : > { %813 = vmatpush1.msra.mxu0 %v420_v27  ;;  %879 = vmatprep.subr.mxu1 %v443_v28  ;;  %v581_v27 = vld [vmem:[%s5098_s1 + $0x7a8] sm:$0xff]  ;;  %v612_v28 = vld [vmem:[%s5098_s1 + $0x8a0] sm:$0xff] }
  0x5c   : > { %814 = vmatprep.subr.mxu0 %v411_v29  ;;  %880 = vmatpush1.msra.mxu1 %v442_v30  ;;  %v580_v29 = vld [vmem:[%s5098_s1 + $0x7a0] sm:$0xff]  ;;  %v603_v30 = vld [vmem:[%s5098_s1 + $0x858] sm:$0xff] }
  0x5d   : > { %815 = vmatpush1.msra.mxu0 %v410_v31  ;;  %881 = vmatprep.subr.mxu1 %v433_v32  ;;  %v571_v31 = vld [vmem:[%s5098_s1 + $0x758] sm:$0xff]  ;;  %v602_v32 = vld [vmem:[%s5098_s1 + $0x850] sm:$0xff] }
  0x5e   : > { %816 = vmatprep.subr.mxu0 %v401_v33  ;;  %882 = vmatpush1.msra.mxu1 %v432_v34  ;;  %v570_v33 = vld [vmem:[%s5098_s1 + $0x750] sm:$0xff]  ;;  %v593_v34 = vld [vmem:[%s5098_s1 + $0x808] sm:$0xff] }
  0x5f   : > { %817 = vmatpush1.msra.mxu0 %v400_v35  ;;  %883 = vmatprep.subr.mxu1 %v423_v36  ;;  %v561_v35 = vld [vmem:[%s5098_s1 + $0x708] sm:$0xff]  ;;  %v592_v36 = vld [vmem:[%s5098_s1 + $0x800] sm:$0xff] }
  0x60   : > { %818 = vmatprep.subr.mxu0 %v391_v37  ;;  %884 = vmatpush1.msra.mxu1 %v422_v38  ;;  %v560_v37 = vld [vmem:[%s5098_s1 + $0x700] sm:$0xff]  ;;  %v583_v38 = vld [vmem:[%s5098_s1 + $0x7b8] sm:$0xff] }
  0x61   : > { %819 = vmatpush1.msra.mxu0 %v390_v39  ;;  %885 = vmatprep.subr.mxu1 %v413_v40  ;;  %v551_v39 = vld [vmem:[%s5098_s1 + $0x6b8] sm:$0xff]  ;;  %v550_v40 = vld [vmem:[%s5098_s1 + $0x6b0] sm:$0xff] }
  0x62   : > { %820 = vmatprep.subr.mxu0 %v381_v41  ;;  %886 = vmatpush1.msra.mxu1 %v412_v42  ;;  %v582_v41 = vld [vmem:[%s5098_s1 + $0x7b0] sm:$0xff]  ;;  %v541_v42 = vld [vmem:[%s5098_s1 + $0x668] sm:$0xff] }
  0x63   : > { %821 = vmatpush1.msra.mxu0 %v380_v43  ;;  %887 = vmatprep.subr.mxu1 %v403_v44  ;;  %v573_v43 = vld [vmem:[%s5098_s1 + $0x768] sm:$0xff]  ;;  %v540_v44 = vld [vmem:[%s5098_s1 + $0x660] sm:$0xff] }
  0x64   : > { %822 = vmatprep.subr.mxu0 %v371_v45  ;;  %888 = vmatpush1.msra.mxu1 %v402_v46  ;;  %v572_v45 = vld [vmem:[%s5098_s1 + $0x760] sm:$0xff]  ;;  %v531_v46 = vld [vmem:[%s5098_s1 + $0x618] sm:$0xff] }
  0x65   : > { %823 = vmatpush1.msra.mxu0 %v370_v47  ;;  %889 = vmatprep.subr.mxu1 %v393_v48  ;;  %v563_v47 = vld [vmem:[%s5098_s1 + $0x718] sm:$0xff]  ;;  %v530_v48 = vld [vmem:[%s5098_s1 + $0x610] sm:$0xff] }
  0x66   : > { %824 = vmatprep.subr.mxu0 %v361_v49  ;;  %890 = vmatpush1.msra.mxu1 %v392_v50  ;;  %v562_v49 = vld [vmem:[%s5098_s1 + $0x710] sm:$0xff]  ;;  %v521_v50 = vld [vmem:[%s5098_s1 + $0x5c8] sm:$0xff] }
  0x67   : > { %825 = vmatpush1.msra.mxu0 %v360_v51  ;;  %891 = vmatprep.subr.mxu1 %v383_v52  ;;  %v553_v51 = vld [vmem:[%s5098_s1 + $0x6c8] sm:$0xff]  ;;  %v520_v52 = vld [vmem:[%s5098_s1 + $0x5c0] sm:$0xff] }
  0x68   : > { %826 = vmatprep.subr.mxu0 %v351_v53  ;;  %892 = vmatpush1.msra.mxu1 %v382_v54  ;;  %v552_v53 = vld [vmem:[%s5098_s1 + $0x6c0] sm:$0xff]  ;;  %v511_v54 = vld [vmem:[%s5098_s1 + $0x578] sm:$0xff] }
  0x69   : > { %827 = vmatpush1.msra.mxu0 %v350_v55  ;;  %893 = vmatprep.subr.mxu1 %v373_v57  ;;  %v543_v55 = vld [vmem:[%s5098_s1 + $0x678] sm:$0xff]  ;;  %v510_v57 = vld [vmem:[%s5098_s1 + $0x570] sm:$0xff] }
  0x6a   : > { %828 = vmatprep.subr.mxu0 %v341_v58  ;;  %894 = vmatpush1.msra.mxu1 %v372_v59  ;;  %v542_v58 = vld [vmem:[%s5098_s1 + $0x670] sm:$0xff]  ;;  %v501_v59 = vld [vmem:[%s5098_s1 + $0x528] sm:$0xff] }
  0x6b   : > { %829 = vmatpush1.msra.mxu0 %v340_v60  ;;  %895 = vmatprep.subr.mxu1 %v363_v61  ;;  %v533_v60 = vld [vmem:[%s5098_s1 + $0x628] sm:$0xff]  ;;  %v500_v61 = vld [vmem:[%s5098_s1 + $0x520] sm:$0xff] }
  0x6c   : > { %830 = vmatprep.subr.mxu0 %v651_v62  ;;  %896 = vmatpush1.msra.mxu1 %v362_v0  ;;  %v532_v62 = vld [vmem:[%s5098_s1 + $0x620] sm:$0xff]  ;;  %v495_v0 = vld [vmem:[%s5098_s1 + $0x4f8] sm:$0xff] }
  0x6d   : > { %831 = vmatpush2.msra.mxu0 %v650_v1  ;;  %897 = vmatprep.subr.mxu1 %v353_v2  ;;  %v494_v1 = vld [vmem:[%s5098_s1 + $0x4f0] sm:$0xff]  ;;  %v523_v2 = vld [vmem:[%s5098_s1 + $0x5d8] sm:$0xff] }
  0x6e   : > { %832 = vmatprep.subr.mxu0 %v641_v3  ;;  %898 = vmatpush1.msra.mxu1 %v352_v4  ;;  %v485_v3 = vld [vmem:[%s5098_s1 + $0x4a8] sm:$0xff]  ;;  %v522_v4 = vld [vmem:[%s5098_s1 + $0x5d0] sm:$0xff] }
  0x6f   : > { %833 = vmatpush2.msra.mxu0 %v640_v5  ;;  %899 = vmatprep.subr.mxu1 %v343_v6  ;;  %v484_v5 = vld [vmem:[%s5098_s1 + $0x4a0] sm:$0xff]  ;;  %v513_v6 = vld [vmem:[%s5098_s1 + $0x588] sm:$0xff] }
  0x70   : > { %834 = vmatprep.subr.mxu0 %v631_v7  ;;  %900 = vmatpush1.msra.mxu1 %v342_v8  ;;  %v475_v7 = vld [vmem:[%s5098_s1 + $0x458] sm:$0xff]  ;;  %v512_v8 = vld [vmem:[%s5098_s1 + $0x580] sm:$0xff] }
  0x71   : > { %835 = vmatpush2.msra.mxu0 %v630_v9  ;;  %901 = vmatprep.subr.mxu1 %v653_v10  ;;  %v474_v9 = vld [vmem:[%s5098_s1 + $0x450] sm:$0xff]  ;;  %v503_v10 = vld [vmem:[%s5098_s1 + $0x538] sm:$0xff] }
  0x72   : > { %836 = vmatprep.subr.mxu0 %v621_v11  ;;  %902 = vmatpush2.msra.mxu1 %v652_v12  ;;  %v465_v11 = vld [vmem:[%s5098_s1 + $0x408] sm:$0xff]  ;;  %v502_v12 = vld [vmem:[%s5098_s1 + $0x530] sm:$0xff] }
  0x73   : > { %837 = vmatpush2.msra.mxu0 %v620_v13  ;;  %903 = vmatprep.subr.mxu1 %v643_v14  ;;  %v464_v13 = vld [vmem:[%s5098_s1 + $0x400] sm:$0xff]  ;;  %v455_v14 = vld [vmem:[%s5098_s1 + $0x3b8] sm:$0xff] }
  0x74   : > { %838 = vmatprep.subr.mxu0 %v611_v15  ;;  %904 = vmatpush2.msra.mxu1 %v642_v16  ;;  %v454_v15 = vld [vmem:[%s5098_s1 + $0x3b0] sm:$0xff]  ;;  %v445_v16 = vld [vmem:[%s5098_s1 + $0x368] sm:$0xff] }
  0x75   : > { %839 = vmatpush2.msra.mxu0 %v610_v17  ;;  %905 = vmatprep.subr.mxu1 %v633_v18  ;;  %v444_v17 = vld [vmem:[%s5098_s1 + $0x360] sm:$0xff]  ;;  %v435_v18 = vld [vmem:[%s5098_s1 + $0x318] sm:$0xff] }
  0x76   : > { %840 = vmatprep.subr.mxu0 %v601_v19  ;;  %906 = vmatpush2.msra.mxu1 %v632_v20  ;;  %v434_v19 = vld [vmem:[%s5098_s1 + $0x310] sm:$0xff]  ;;  %v425_v20 = vld [vmem:[%s5098_s1 + $0x2c8] sm:$0xff] }
  0x77   : > { %841 = vmatpush2.msra.mxu0 %v600_v21  ;;  %907 = vmatprep.subr.mxu1 %v623_v22  ;;  %v424_v21 = vld [vmem:[%s5098_s1 + $0x2c0] sm:$0xff]  ;;  %v414_v22 = vld [vmem:[%s5098_s1 + $0x270] sm:$0xff] }
  0x78   : > { %842 = vmatprep.subr.mxu0 %v591_v23  ;;  %908 = vmatpush2.msra.mxu1 %v622_v24  ;;  %v405_v23 = vld [vmem:[%s5098_s1 + $0x228] sm:$0xff]  ;;  %v404_v24 = vld [vmem:[%s5098_s1 + $0x220] sm:$0xff] }
  0x79   : > { %843 = vmatpush2.msra.mxu0 %v590_v25  ;;  %909 = vmatprep.subr.mxu1 %v613_v26  ;;  %v395_v25 = vld [vmem:[%s5098_s1 + $0x1d8] sm:$0xff]  ;;  %v394_v26 = vld [vmem:[%s5098_s1 + $0x1d0] sm:$0xff] }
  0x7a   : > { %844 = vmatprep.subr.mxu0 %v581_v27  ;;  %910 = vmatpush2.msra.mxu1 %v612_v28  ;;  %v385_v27 = vld [vmem:[%s5098_s1 + $0x188] sm:$0xff]  ;;  %v384_v28 = vld [vmem:[%s5098_s1 + $0x180] sm:$0xff] }
  0x7b   : > { %845 = vmatpush2.msra.mxu0 %v580_v29  ;;  %911 = vmatprep.subr.mxu1 %v603_v30  ;;  %v375_v29 = vld [vmem:[%s5098_s1 + $0x138] sm:$0xff]  ;;  %v374_v30 = vld [vmem:[%s5098_s1 + $0x130] sm:$0xff] }
  0x7c   : > { %846 = vmatprep.subr.mxu0 %v571_v31  ;;  %912 = vmatpush2.msra.mxu1 %v602_v32  ;;  %v365_v31 = vld [vmem:[%s5098_s1 + $0xe8] sm:$0xff]  ;;  %v364_v32 = vld [vmem:[%s5098_s1 + $0xe0] sm:$0xff] }
  0x7d   : > { %847 = vmatpush2.msra.mxu0 %v570_v33  ;;  %913 = vmatprep.subr.mxu1 %v593_v34  ;;  %v355_v33 = vld [vmem:[%s5098_s1 + $0x98] sm:$0xff]  ;;  %v354_v34 = vld [vmem:[%s5098_s1 + $0x90] sm:$0xff] }
  0x7e   : > { %848 = vmatprep.subr.mxu0 %v561_v35  ;;  %914 = vmatpush2.msra.mxu1 %v592_v36  ;;  %v345_v35 = vld [vmem:[%s5098_s1 + $0x48] sm:$0xff]  ;;  %v344_v36 = vld [vmem:[%s5098_s1 + $0x40] sm:$0xff] }
  0x7f   : > { %849 = vmatpush2.msra.mxu0 %v560_v37  ;;  %915 = vmatprep.subr.mxu1 %v583_v38  ;;  %v655_v37 = vld [vmem:[%s5098_s1 + $0x9f8] sm:$0xff]  ;;  %v654_v38 = vld [vmem:[%s5098_s1 + $0x9f0] sm:$0xff] }
  0x80   : > { %850 = vmatprep.subr.mxu0 %v551_v39  ;;  %862 = vmatprep.mubr.f32.mxu0 %v3655_v56  ;;  %v645_v39 = vld [vmem:[%s5098_s1 + $0x9a8] sm:$0xff] }
  0x81   : > { %851 = vmatpush2.msra.mxu0 %v550_v40  ;;  %916 = vmatpush2.msra.mxu1 %v582_v41  ;;  %v644_v40 = vld [vmem:[%s5098_s1 + $0x9a0] sm:$0xff]  ;;  %v635_v41 = vld [vmem:[%s5098_s1 + $0x958] sm:$0xff] }
  0x82   : > { %852 = vmatprep.subr.mxu0 %v541_v42  ;;  %917 = vmatprep.subr.mxu1 %v573_v43  ;;  %v634_v42 = vld [vmem:[%s5098_s1 + $0x950] sm:$0xff]  ;;  %v625_v43 = vld [vmem:[%s5098_s1 + $0x908] sm:$0xff] }
  0x83   : > { %853 = vmatpush2.msra.mxu0 %v540_v44  ;;  %918 = vmatpush2.msra.mxu1 %v572_v45  ;;  %v624_v44 = vld [vmem:[%s5098_s1 + $0x900] sm:$0xff]  ;;  %v615_v45 = vld [vmem:[%s5098_s1 + $0x8b8] sm:$0xff] }
  0x84   : > { %854 = vmatprep.subr.mxu0 %v531_v46  ;;  %919 = vmatprep.subr.mxu1 %v563_v47  ;;  %v614_v46 = vld [vmem:[%s5098_s1 + $0x8b0] sm:$0xff]  ;;  %v605_v47 = vld [vmem:[%s5098_s1 + $0x868] sm:$0xff] }
  0x85   : > { %855 = vmatpush2.msra.mxu0 %v530_v48  ;;  %920 = vmatpush2.msra.mxu1 %v562_v49  ;;  %v604_v48 = vld [vmem:[%s5098_s1 + $0x860] sm:$0xff]  ;;  %v595_v49 = vld [vmem:[%s5098_s1 + $0x818] sm:$0xff] }
  0x86   : > { %856 = vmatprep.subr.mxu0 %v521_v50  ;;  %921 = vmatprep.subr.mxu1 %v553_v51  ;;  %v594_v50 = vld [vmem:[%s5098_s1 + $0x810] sm:$0xff]  ;;  %v585_v51 = vld [vmem:[%s5098_s1 + $0x7c8] sm:$0xff] }
  0x87   : > { %857 = vmatpush2.msra.mxu0 %v520_v52  ;;  %922 = vmatpush2.msra.mxu1 %v552_v53  ;;  %v584_v52 = vld [vmem:[%s5098_s1 + $0x7c0] sm:$0xff]  ;;  %v575_v53 = vld [vmem:[%s5098_s1 + $0x778] sm:$0xff] }
  0x88   : > { %858 = vmatprep.subr.mxu0 %v511_v54  ;;  %923 = vmatprep.subr.mxu1 %v543_v55  ;;  %v574_v54 = vld [vmem:[%s5098_s1 + $0x770] sm:$0xff]  ;;  %v565_v55 = vld [vmem:[%s5098_s1 + $0x728] sm:$0xff] }
  0x89   : > { %859 = vmatpush2.msra.mxu0 %v510_v57  ;;  %924 = vmatpush2.msra.mxu1 %v542_v58  ;;  %v564_v57 = vld [vmem:[%s5098_s1 + $0x720] sm:$0xff]  ;;  %v555_v58 = vld [vmem:[%s5098_s1 + $0x6d8] sm:$0xff] }
  0x8a   : > { %860 = vmatprep.subr.mxu0 %v501_v59  ;;  %925 = vmatprep.subr.mxu1 %v533_v60  ;;  %v554_v59 = vld [vmem:[%s5098_s1 + $0x6d0] sm:$0xff]  ;;  %v545_v60 = vld [vmem:[%s5098_s1 + $0x688] sm:$0xff] }
  0x8b   : > { %861 = vmatpush2.msra.mxu0 %v500_v61  ;;  %926 = vmatpush2.msra.mxu1 %v532_v62  ;;  %v544_v61 = vld [vmem:[%s5098_s1 + $0x680] sm:$0xff]  ;;  %v535_v62 = vld [vmem:[%s5098_s1 + $0x638] sm:$0xff] }
  0x8c   : > { %863 = vmatmul.mubr.f32.vlgmr.msra.gmra.mxu0 %v3676_v63  ;;  %940 = vmatprep.subr.mxu0 %v495_v0  ;;  %v534_v0 = vld [vmem:[%s5098_s1 + $0x630] sm:$0xff] }
  0x8d   : > { %941 = vmatpush1.msra.mxu0 %v494_v1  ;;  %927 = vmatprep.subr.mxu1 %v523_v2  ;;  %v525_v1 = vld [vmem:[%s5098_s1 + $0x5e8] sm:$0xff]  ;;  %v524_v2 = vld [vmem:[%s5098_s1 + $0x5e0] sm:$0xff] }
  0x8e   : > { %942 = vmatprep.subr.mxu0 %v485_v3  ;;  %928 = vmatpush2.msra.mxu1 %v522_v4  ;;  %v515_v3 = vld [vmem:[%s5098_s1 + $0x598] sm:$0xff]  ;;  %v514_v4 = vld [vmem:[%s5098_s1 + $0x590] sm:$0xff] }
  0x8f   : > { %943 = vmatpush1.msra.mxu0 %v484_v5  ;;  %929 = vmatprep.subr.mxu1 %v513_v6  ;;  %v505_v5 = vld [vmem:[%s5098_s1 + $0x548] sm:$0xff]  ;;  %v504_v6 = vld [vmem:[%s5098_s1 + $0x540] sm:$0xff] }
  0x90   : > { %944 = vmatprep.subr.mxu0 %v475_v7  ;;  %930 = vmatpush2.msra.mxu1 %v512_v8 }
  0x91   : > { %945 = vmatpush1.msra.mxu0 %v474_v9  ;;  %931 = vmatprep.subr.mxu1 %v503_v10 }
  0x92   : > { %946 = vmatprep.subr.mxu0 %v465_v11  ;;  %932 = vmatpush2.msra.mxu1 %v502_v12  ;;  %v3216_v12 = vmov 0  }
  0x93   : > { %947 = vmatpush1.msra.mxu0 %v464_v13  ;;  %933 = vmatprep.mubr.f32.mxu1 %v3655_v56 }
  0x94   : > { %948 = vmatprep.subr.mxu0 %v455_v14  ;;  %934 = vmatmul.mubr.f32.vlgmr.msra.gmra.mxu1 %v3676_v63 }
  0x95   : > { %949 = vmatpush1.msra.mxu0 %v454_v15  ;;  %1004 = vmatprep.mubr.f32.mxu0 %v3655_v56  ;;  %v415_v56 = vld [vmem:[%s5098_s1 + $0x278] sm:$0xff] }
  0x96   : > { %950 = vmatprep.subr.mxu0 %v445_v16  ;;  %1706 = vmatprep.mubr.bf16.mxu1 %v3216_v12 }
  0x97   : > { %951 = vmatpush1.msra.mxu0 %v444_v17  ;;  %3168 = vset.pattern.permute.xlu0 %v3216_v12 }
  0x98   : > { %952 = vmatprep.subr.mxu0 %v435_v18  ;;  %3169 = vset.pattern.permute.xlu1 %v3216_v12 }
  0x99   : > { %953 = vmatpush1.msra.mxu0 %v434_v19 }
  0x9a   : > { %954 = vmatprep.subr.mxu0 %v425_v20 }
  0x9b   : > { %955 = vmatpush1.msra.mxu0 %v424_v21 }
  0x9c   : > { %956 = vmatprep.subr.mxu0 %v415_v56 }
  0x9d   : > { %957 = vmatpush1.msra.mxu0 %v414_v22 }
  0x9e   : > { %958 = vmatprep.subr.mxu0 %v405_v23 }
  0x9f   : > { %959 = vmatpush1.msra.mxu0 %v404_v24 }
  0xa0   : > { %960 = vmatprep.subr.mxu0 %v395_v25 }
  0xa1   : > { %961 = vmatpush1.msra.mxu0 %v394_v26 }
  0xa2   : > { %962 = vmatprep.subr.mxu0 %v385_v27 }
  0xa3   : > { %963 = vmatpush1.msra.mxu0 %v384_v28 }
  0xa4   : > { %964 = vmatprep.subr.mxu0 %v375_v29 }
  0xa5   : > { %965 = vmatpush1.msra.mxu0 %v374_v30 }
  0xa6   : > { %966 = vmatprep.subr.mxu0 %v365_v31 }
  0xa7   : > { %967 = vmatpush1.msra.mxu0 %v364_v32 }
  0xa8   : > { %968 = vmatprep.subr.mxu0 %v355_v33 }
  0xa9   : > { %969 = vmatpush1.msra.mxu0 %v354_v34 }
  0xaa   : > { %970 = vmatprep.subr.mxu0 %v345_v35 }
  0xab   : > { %971 = vmatpush1.msra.mxu0 %v344_v36 }
  0xac   : > { %972 = vmatprep.subr.mxu0 %v655_v37 }
  0xad   : > { %973 = vmatpush2.msra.mxu0 %v654_v38 }
  0xae   : > { %974 = vmatprep.subr.mxu0 %v645_v39 }
  0xaf   : > { %975 = vmatpush2.msra.mxu0 %v644_v40 }
  0xb0   : > { %976 = vmatprep.subr.mxu0 %v635_v41 }
  0xb1   : > { %977 = vmatpush2.msra.mxu0 %v634_v42 }
  0xb2   : > { %978 = vmatprep.subr.mxu0 %v625_v43 }
  0xb3   : > { %979 = vmatpush2.msra.mxu0 %v624_v44 }
  0xb4   : > { %980 = vmatprep.subr.mxu0 %v615_v45 }
  0xb5   : > { %981 = vmatpush2.msra.mxu0 %v614_v46 }
  0xb6   : > { %982 = vmatprep.subr.mxu0 %v605_v47 }
  0xb7   : > { %983 = vmatpush2.msra.mxu0 %v604_v48 }
  0xb8   : > { %984 = vmatprep.subr.mxu0 %v595_v49  ;;  %v3217_v49 = vmov 0.0  }
  0xb9   : > { %985 = vmatpush2.msra.mxu0 %v594_v50 }
  0xba   : > { %986 = vmatprep.subr.mxu0 %v585_v51 }
  0xbb   : > { %987 = vmatpush2.msra.mxu0 %v584_v52 }
  0xbc   : > { %988 = vmatprep.subr.mxu0 %v575_v53 }
  0xbd   : > { %989 = vmatpush2.msra.mxu0 %v574_v54 }
  0xbe   : > { %990 = vmatprep.subr.mxu0 %v565_v55 }
  0xbf   : > { %991 = vmatpush2.msra.mxu0 %v564_v57 }
  0xc0   : > { %992 = vmatprep.subr.mxu0 %v555_v58 }
  0xc1   : > { %993 = vmatpush2.msra.mxu0 %v554_v59 }
  0xc2   : > { %994 = vmatprep.subr.mxu0 %v545_v60 }
  0xc3   : > { %995 = vmatpush2.msra.mxu0 %v544_v61 }
  0xc4   : > { %996 = vmatprep.subr.mxu0 %v535_v62 }
  0xc5   : > { %997 = vmatpush2.msra.mxu0 %v534_v0 }
  0xc6   : > { %998 = vmatprep.subr.mxu0 %v525_v1 }
  0xc7   : > { %999 = vmatpush2.msra.mxu0 %v524_v2 }
  0xc8   : > { %1000 = vmatprep.subr.mxu0 %v515_v3 }
  0xc9   : > { %1001 = vmatpush2.msra.mxu0 %v514_v4 }
  0xca   : > { %1002 = vmatprep.subr.mxu0 %v505_v5 }
  0xcb   : > { %1003 = vmatpush2.msra.mxu0 %v504_v6 }
  0xcc   : > { %1005 = vmatmul.mubr.f32.vlgmr.msra.gmra.mxu0 %v3676_v63  ;;  %3118 = vmatprep.subr.bf16.mxu0 %v3217_v49 }
  0xcd   : > { %3128 = vmatprep.mubr.msk.bf16.mxu0 %vm3218_vm10, %v3217_v49 }
 0x10c   : > { %v4269_v7 = vpop.f32.mrf.mxu0 }
 0x10e   : > { %v4271_v8 = vpop.f32.mrf.mxu0 }
 0x10f   : > { %v4275_v9 = vpack.c.bf16 %v4271_v8, %v4269_v7 }
 0x110   : > { %v4277_v10 = vpop.f32.mrf.mxu1 }
 0x111   : > { %1284 = vrot.lane.b32.xlu1 %v4275_v9, %s3208_s17  ;;  %1354 = vrot.lane.b32.xlu0 %v4275_v9, %s3209_s26 }
 0x112   : > { %v4283_v11 = vpop.f32.mrf.mxu1 }
 0x113   : > { %v4287_v63 = vpack.c.bf16 %v4283_v11, %v4277_v10 }
 0x115   : > { %1286 = vrot.lane.b32.xlu1 %v4287_v63, %s3208_s17  ;;  %1356 = vrot.lane.b32.xlu0 %v4287_v63, %s3209_s26 }
 0x119   : > { %1321 = vrot.lane.b32.xlu1 %v4287_v63, %s3210_s12  ;;  %1319 = vrot.lane.b32.xlu0 %v4275_v9, %s3210_s12 }
 0x11d   : > { %1215 = vrot.lane.b32.xlu1 %v4287_v63, %s3211_s13  ;;  %1213 = vrot.lane.b32.xlu0 %v4275_v9, %s3211_s13 }
 0x121   : > { %1249 = vrot.lane.b32.xlu1 %v4287_v63, %s3212_s14  ;;  %1247 = vrot.lane.b32.xlu0 %v4275_v9, %s3212_s14 }
 0x125   : > { %1147 = vrot.lane.b32.xlu1 %v4287_v63, %s3213_s15  ;;  %1145 = vrot.lane.b32.xlu0 %v4275_v9, %s3213_s15 }
 0x129   : > { %1181 = vrot.lane.b32.xlu1 %v4287_v63, %s3214_s16  ;;  %1179 = vrot.lane.b32.xlu0 %v4275_v9, %s3214_s16 }
 0x12d   : > { %1112 = vrot.lane.b32.xlu1 %v4287_v63, %s3215_s18  ;;  %1110 = vrot.lane.b32.xlu0 %v4275_v9, %s3215_s18 }
 0x14c   : > { %v4320_v13 = vpop.f32.mrf.mxu0 }
 0x14e   : > { %v4322_v14 = vpop.f32.mrf.mxu0 }
 0x14f   : > { %v4326_v15 = vpack.c.bf16 %v4322_v14, %v4320_v13 }
 0x151   : > { %1288 = vrot.lane.b32.xlu1 %v4326_v15, %s3208_s17  ;;  %1358 = vrot.lane.b32.xlu0 %v4326_v15, %s3209_s26 }
 0x154   : > { %v4336_v16 = vpop.f32.mrf.mxu1 }
 0x155   : > { %1217 = vrot.lane.b32.xlu1 %v4326_v15, %s3211_s13  ;;  %1323 = vrot.lane.b32.xlu0 %v4326_v15, %s3210_s12 }
 0x156   : > { %v4342_v17 = vpop.f32.mrf.mxu1 }
 0x157   : > { %v4350_v18 = vpack.c.bf16 %v4342_v17, %v4336_v16 }
 0x159   : > { %1149 = vrot.lane.b32.xlu1 %v4326_v15, %s3213_s15  ;;  %1251 = vrot.lane.b32.xlu0 %v4326_v15, %s3212_s14 }
 0x15d   : > { %1114 = vrot.lane.b32.xlu1 %v4326_v15, %s3215_s18  ;;  %1183 = vrot.lane.b32.xlu0 %v4326_v15, %s3214_s16 }
 0x161   : > { %1290 = vrot.lane.b32.xlu1 %v4350_v18, %s3208_s17  ;;  %1360 = vrot.lane.b32.xlu0 %v4350_v18, %s3209_s26 }
 0x165   : > { %1219 = vrot.lane.b32.xlu1 %v4350_v18, %s3211_s13  ;;  %1325 = vrot.lane.b32.xlu0 %v4350_v18, %s3210_s12 }
 0x169   : > { %1151 = vrot.lane.b32.xlu1 %v4350_v18, %s3213_s15  ;;  %1253 = vrot.lane.b32.xlu0 %v4350_v18, %s3212_s14 }
 0x16d   : > { %1116 = vrot.lane.b32.xlu1 %v4350_v18, %s3215_s18  ;;  %1185 = vrot.lane.b32.xlu0 %v4350_v18, %s3214_s16 }
 0x183   : > { %v1285_v19 = vpop.permute.xlu1 %1284  ;;  %v1355_v20 = vpop.permute.xlu0 %1354 }
 0x184   : > { %v1364_v22 = vrot.slane %v1355_v20, 4  ;;  %v1294_v25 = vrot.slane %v1285_v19, 4 }
 0x187   : > { %v4368_v21 = vpop.permute.xlu1 %1286  ;;  %v4370_v56 = vpop.permute.xlu0 %1356 }
 0x188   : > { %v1295_v23 = vrot.slane %v4368_v21, 4  ;;  %v1365_v24 = vrot.slane %v4370_v56, 4 }
 0x18a   : > { %v1369_v26 = vsel %vm1125_vm0, %v1364_v22, %v1365_v24  ;;  %v1299_v27 = vsel %vm1125_vm0, %v1294_v25, %v1295_v23  ;;  %v1893_v22 = vld [vmem:[%s5101_s4] sm:$0xff] }
 0x18b   : > { %v1371_v28 = vsel %vm1370_vm1, %v1355_v20, %v1369_v26  ;;  %v4381_v29 = vpop.permute.xlu1 %1321  ;;  %v1320_v30 = vpop.permute.xlu0 %1319  ;;  %v1301_v40 = vsel %vm1300_vm2, %v1285_v19, %v1299_v27  ;;  %v1878_v20 = vld [vmem:[%s5100_s3] sm:$0xff] }
 0x18c   : > { %v1330_v31 = vrot.slane %v4381_v29, 4  ;;  %v1329_v32 = vrot.slane %v1320_v30, 4  ;;  %v4384_v33 = vpop.f32.mrf.mxu0  ;;  %v3014_v34 = vcombine.high %v1371_v28, %v1371_v28  ;;  %v3013_v35 = vcombine.low %v1371_v28, %v1371_v28 }
 0x18d   : > { %v3099_v36 = vpack.c.bf16 %v4384_v33, %v4384_v33 }
 0x18e   : > { %v1334_v37 = vsel %vm1125_vm0, %v1329_v32, %v1330_v31  ;;  %v1008_v38 = vpop.f32.mrf.mxu0  ;;  %3022 = vmatprep.subr.msk.bf16.mxu1 %vm1125_vm0, %v3014_v34  ;;  %v1648_v39 = vsel %vm1125_vm0, %v3013_v35, 0 }
 0x18f   : > { %v1336_v41 = vsel %vm1335_vm3, %v1320_v30, %v1334_v37  ;;  %1109 = vst.msk [vmem:[#allocation2 + $0x20] sm:$0xf] %vm1108_vm4, %v3099_v36  ;;  %v3100_v42 = vpack.c.bf16 %v1008_v38, %v4384_v33  ;;  %v4397_v43 = vpop.permute.xlu1 %1215  ;;  %v1214_v44 = vpop.permute.xlu0 %1213  ;;  %1681 = vmatpush1.bf16.msra.mxu1 %v1648_v39 }
 0x190   : > { %v1224_v45 = vrot.slane %v4397_v43, 4  ;;  %v1223_v46 = vrot.slane %v1214_v44, 4  ;;  %v3005_v47 = vcombine.high %v1301_v40, %v1336_v41  ;;  %v3004_v48 = vcombine.low %v1301_v40, %v1336_v41  ;;  %v4452_v40 = vld [vmem:[%s5099_s2] sm:$0xf] }
 0x191   : > { %1292 = vrot.lane.b32.xlu1 %v3100_v42, %s3208_s17  ;;  %1362 = vrot.lane.b32.xlu0 %v3100_v42, %s3209_s26 }
 0x192   : > { %1682 = vmatprep.subr.bf16.mxu1 %v3005_v47  ;;  %v1228_v52 = vsel %vm1125_vm0, %v1223_v46, %v1224_v45 }
 0x193   : > { %v4403_v50 = vpop.permute.xlu1 %1249  ;;  %v1248_v51 = vpop.permute.xlu0 %1247  ;;  %1683 = vmatpush1.bf16.msra.mxu1 %v3004_v48  ;;  %v1230_v57 = vsel %vm1038_vm5, %v1214_v44, %v1228_v52 }
 0x194   : > { %v1258_v53 = vrot.slane %v4403_v50, 4  ;;  %v1257_v54 = vrot.slane %v1248_v51, 4 }
 0x195   : > { %1221 = vrot.lane.b32.xlu1 %v3099_v36, %s3211_s13  ;;  %1327 = vrot.lane.b32.xlu0 %v3100_v42, %s3210_s12 }
 0x196   : > { %v1262_v55 = vsel %vm1125_vm0, %v1257_v54, %v1258_v53 }
 0x197   : > { %v1264_v58 = vsel %vm1263_vm6, %v1248_v51, %v1262_v55  ;;  %v4416_v59 = vpop.permute.xlu1 %1147  ;;  %v1146_v60 = vpop.permute.xlu0 %1145 }
 0x198   : > { %v1156_v61 = vrot.slane %v4416_v59, 4  ;;  %v1155_v62 = vrot.slane %v1146_v60, 4  ;;  %v2996_v0 = vcombine.high %v1230_v57, %v1264_v58  ;;  %v2995_v1 = vcombine.low %v1230_v57, %v1264_v58 }
 0x199   : > { %1153 = vrot.lane.b32.xlu1 %v3099_v36, %s3213_s15  ;;  %1255 = vrot.lane.b32.xlu0 %v3099_v36, %s3212_s14 }
 0x19a   : > { %1684 = vmatprep.subr.bf16.mxu1 %v2996_v0  ;;  %v1160_v4 = vsel %vm1125_vm0, %v1155_v62, %v1156_v61 }
 0x19b   : > { %v4421_v2 = vpop.permute.xlu1 %1181  ;;  %v1180_v3 = vpop.permute.xlu0 %1179  ;;  %1685 = vmatpush1.bf16.msra.mxu1 %v2995_v1  ;;  %v1162_v25 = vsel %vm1161_vm7, %v1146_v60, %v1160_v4 }
 0x19c   : > { %v1190_v5 = vrot.slane %v4421_v2, 4  ;;  %v1189_v6 = vrot.slane %v1180_v3, 4 }
 0x19d   : > { %1118 = vrot.lane.b32.xlu1 %v3099_v36, %s3215_s18  ;;  %1187 = vrot.lane.b32.xlu0 %v3099_v36, %s3214_s16 }
 0x19e   : > { %v1194_v19 = vsel %vm1125_vm0, %v1189_v6, %v1190_v5 }
 0x19f   : > { %v1196_v26 = vsel %vm1195_vm8, %v1180_v3, %v1194_v19  ;;  %v4440_v27 = vpop.permute.xlu1 %1112  ;;  %v1111_v28 = vpop.permute.xlu0 %1110 }
 0x1a0   : > { %v1121_v30 = vrot.slane %v4440_v27, 4  ;;  %v1120_v32 = vrot.slane %v1111_v28, 4  ;;  %v2987_v34 = vcombine.high %v1162_v25, %v1196_v26  ;;  %v2986_v35 = vcombine.low %v1162_v25, %v1196_v26 }
 0x1a1   : > { %1881 = vperm.xlu0 %3168, %v1878_v20   ;;  %1896 = vperm.xlu1 %3169, %v1893_v22  }
 0x1a2   : > { %v1126_v36 = vsel %vm1125_vm0, %v1120_v32, %v1121_v30  ;;  %1686 = vmatprep.subr.bf16.mxu1 %v2987_v34 }
 0x1a3   : > { %v1128_v37 = vsel %vm1127_vm9, %v1111_v28, %v1126_v36  ;;  %1687 = vmatpush1.bf16.msra.mxu1 %v2986_v35 }
 0x1a4   : > { %v2978_v38 = vcombine.high %v4275_v9, %v1128_v37  ;;  %v2977_v39 = vcombine.low %v4275_v9, %v1128_v37 }
 0x1a6   : > { %1688 = vmatprep.subr.bf16.mxu1 %v2978_v38 }
 0x1a7   : > { %1689 = vmatpush1.bf16.msra.mxu1 %v2977_v39 }
 0x1aa   : > { %3023 = vmatmul.mubr.msk.bf16.vlgmr.msra.gmra.mxu1 %vm1642_vm11, %v4452_v40 }
 0x1ab   : > { %1747 = vmatprep.mubr.bf16.mxu1 %v3216_v12 }
 0x1c3   : > { %v4457_v41 = vpop.permute.xlu1 %1288  ;;  %v1359_v42 = vpop.permute.xlu0 %1358 }
 0x1c4   : > { %v1296_v44 = vrot.slane %v4457_v41, 4  ;;  %v1366_v46 = vrot.slane %v1359_v42, 4 }
 0x1c6   : > { %v1372_v9 = vsel %vm1125_vm0, %v1365_v24, %v1366_v46  ;;  %v1302_v47 = vsel %vm1125_vm0, %v1295_v23, %v1296_v44 }
 0x1c7   : > { %v1373_v48 = vsel %vm1370_vm1, %v4370_v56, %v1372_v9  ;;  %v4468_v51 = vpop.permute.xlu1 %1217  ;;  %v1324_v52 = vpop.permute.xlu0 %1323  ;;  %v1303_v23 = vsel %vm1300_vm2, %v4368_v21, %v1302_v47 }
 0x1c8   : > { %v1225_v54 = vrot.slane %v4468_v51, 4  ;;  %v1331_v55 = vrot.slane %v1324_v52, 4  ;;  %v3016_v57 = vcombine.high %v1373_v48, %v1373_v48  ;;  %v3015_v58 = vcombine.low %v1373_v48, %v1373_v48 }
 0x1ca   : > { %v1337_v60 = vsel %vm1125_vm0, %v1330_v31, %v1331_v55  ;;  %3024 = vmatprep.subr.msk.bf16.mxu1 %vm1125_vm0, %v3016_v57  ;;  %v1654_v24 = vsel %vm1125_vm0, %v3015_v58, 0  ;;  %v1231_v56 = vsel %vm1125_vm0, %v1224_v45, %v1225_v54 }
 0x1cb   : > { %v1338_v62 = vsel %vm1335_vm3, %v4381_v29, %v1337_v60  ;;  %v4485_v0 = vpop.permute.xlu1 %1149  ;;  %v1252_v1 = vpop.permute.xlu0 %1251  ;;  %1722 = vmatpush1.bf16.msra.mxu1 %v1654_v24  ;;  %v1232_v45 = vsel %vm1038_vm5, %v4397_v43, %v1231_v56 }
 0x1cc   : > { %v1157_v31 = vrot.slane %v4485_v0, 4  ;;  %v1259_v3 = vrot.slane %v1252_v1, 4  ;;  %v3007_v4 = vcombine.high %v1303_v23, %v1338_v62  ;;  %v3006_v6 = vcombine.low %v1303_v23, %v1338_v62 }
 0x1ce   : > { %v1265_v21 = vsel %vm1125_vm0, %v1258_v53, %v1259_v3  ;;  %1723 = vmatprep.subr.bf16.mxu1 %v3007_v4  ;;  %v1163_v29 = vsel %vm1125_vm0, %v1156_v61, %v1157_v31 }
 0x1cf   : > { %v1266_v19 = vsel %vm1263_vm6, %v4403_v50, %v1265_v21  ;;  %v4500_v20 = vpop.permute.xlu1 %1114  ;;  %v1184_v22 = vpop.permute.xlu0 %1183  ;;  %1724 = vmatpush1.bf16.msra.mxu1 %v3006_v6  ;;  %v1164_v61 = vsel %vm1161_vm7, %v4416_v59, %v1163_v29 }
 0x1d0   : > { %v1122_v25 = vrot.slane %v4500_v20, 4  ;;  %v1191_v53 = vrot.slane %v1184_v22, 4  ;;  %v2998_v26 = vcombine.high %v1232_v45, %v1266_v19  ;;  %v2997_v28 = vcombine.low %v1232_v45, %v1266_v19 }
 0x1d2   : > { %v1129_v43 = vsel %vm1125_vm0, %v1121_v30, %v1122_v25  ;;  %v1197_v32 = vsel %vm1125_vm0, %v1190_v5, %v1191_v53  ;;  %1725 = vmatprep.subr.bf16.mxu1 %v2998_v26 }
 0x1d3   : > { %v1130_v50 = vsel %vm1127_vm9, %v4440_v27, %v1129_v43  ;;  %v1198_v34 = vsel %vm1195_vm8, %v4421_v2, %v1197_v32  ;;  %v4513_v35 = vpop.permute.xlu1 %1290  ;;  %v4515_v36 = vpop.permute.xlu0 %1360  ;;  %1726 = vmatpush1.bf16.msra.mxu1 %v2997_v28 }
 0x1d4   : > { %v1367_v30 = vrot.slane %v4515_v36, 4  ;;  %v2989_v37 = vcombine.high %v1164_v61, %v1198_v34  ;;  %v2988_v38 = vcombine.low %v1164_v61, %v1198_v34  ;;  %v1297_v5 = vrot.slane %v4513_v35, 4 }
 0x1d5   : > { %v2980_v27 = vcombine.high %v4287_v63, %v1130_v50  ;;  %v2979_v57 = vcombine.low %v4287_v63, %v1130_v50 }
 0x1d6   : > { %v1374_v59 = vsel %vm1125_vm0, %v1366_v46, %v1367_v30  ;;  %1727 = vmatprep.subr.bf16.mxu1 %v2989_v37  ;;  %v1304_v46 = vsel %vm1125_vm0, %v1296_v44, %v1297_v5 }
 0x1d7   : > { %v1375_v2 = vsel %vm1370_vm1, %v1359_v42, %v1374_v59  ;;  %v4524_v39 = vpop.permute.xlu1 %1219  ;;  %v4526_v9 = vpop.permute.xlu0 %1325  ;;  %1728 = vmatpush1.bf16.msra.mxu1 %v2988_v38  ;;  %v1305_v63 = vsel %vm1300_vm2, %v4457_v41, %v1304_v46 }
 0x1d8   : > { %v1332_v47 = vrot.slane %v4526_v9, 4  ;;  %1729 = vmatprep.subr.bf16.mxu1 %v2980_v27  ;;  %v1226_v48 = vrot.slane %v4524_v39, 4  ;;  %v3018_v58 = vcombine.high %v1375_v2, %v1375_v2  ;;  %v3017_v60 = vcombine.low %v1375_v2, %v1375_v2 }
 0x1da   : > { %v1339_v42 = vsel %vm1125_vm0, %v1331_v55, %v1332_v47  ;;  %v1233_v44 = vsel %vm1125_vm0, %v1225_v54, %v1226_v48  ;;  %v1660_v4 = vsel %vm1125_vm0, %v3017_v60, 0 }
 0x1db   : > { %v1340_v24 = vsel %vm1335_vm3, %v1324_v52, %v1339_v42  ;;  %v4538_v23 = vpop.permute.xlu1 %1151  ;;  %v4540_v56 = vpop.permute.xlu0 %1253  ;;  %1730 = vmatpush1.bf16.msra.mxu1 %v2979_v57 }
 0x1dc   : > { %v1260_v62 = vrot.slane %v4540_v56, 4  ;;  %3026 = vmatprep.subr.msk.bf16.mxu1 %vm1125_vm0, %v3018_v58  ;;  %v1158_v52 = vrot.slane %v4538_v23, 4  ;;  %v3009_v6 = vcombine.high %v1305_v63, %v1340_v24  ;;  %v3008_v19 = vcombine.low %v1305_v63, %v1340_v24 }
 0x1de   : > { %v1267_v55 = vsel %vm1125_vm0, %v1259_v3, %v1260_v62  ;;  %3025 = vmatmul.mubr.msk.bf16.vlgmr.msra.gmra.mxu1 %vm1642_vm11, %v4452_v40  ;;  %v1234_v3 = vsel %vm1038_vm5, %v4468_v51, %v1233_v44 }
 0x1df   : > { %v1268_v41 = vsel %vm1263_vm6, %v1252_v1, %v1267_v55  ;;  %v4559_v21 = vpop.permute.xlu1 %1116  ;;  %v4561_v45 = vpop.permute.xlu0 %1185  ;;  %1763 = vmatpush1.bf16.msra.mxu1 %v1660_v4  ;;  %1788 = vmatprep.mubr.bf16.mxu1 %v3216_v12  ;;  %v1165_v1 = vsel %vm1125_vm0, %v1157_v31, %v1158_v52 }
 0x1e0   : > { %v1123_v54 = vrot.slane %v4559_v21, 4  ;;  %v1192_v29 = vrot.slane %v4561_v45, 4  ;;  %1764 = vmatprep.subr.bf16.mxu1 %v3009_v6  ;;  %v3000_v28 = vcombine.high %v1234_v3, %v1268_v41  ;;  %v1166_v51 = vsel %vm1161_vm7, %v4485_v0, %v1165_v1 }
 0x1e1   : > { %v2999_v61 = vcombine.low %v1234_v3, %v1268_v41 }
 0x1e2   : > { %v1199_v26 = vsel %vm1125_vm0, %v1191_v53, %v1192_v29  ;;  %v1131_v32 = vsel %vm1125_vm0, %v1122_v25, %v1123_v54 }
 0x1e3   : > { %v1200_v43 = vsel %vm1195_vm8, %v1184_v22, %v1199_v26  ;;  %1765 = vmatpush1.bf16.msra.mxu1 %v3008_v19  ;;  %v1132_v31 = vsel %vm1127_vm9, %v4500_v20, %v1131_v32 }
 0x1e4   : > { %1766 = vmatprep.subr.bf16.mxu1 %v3000_v28  ;;  %v2991_v50 = vcombine.high %v1166_v51, %v1200_v43  ;;  %v2990_v53 = vcombine.low %v1166_v51, %v1200_v43  ;;  %v2982_v34 = vcombine.high %v4326_v15, %v1132_v31  ;;  %v2981_v22 = vcombine.low %v4326_v15, %v1132_v31 }
 0x1e7   : > { %1767 = vmatpush1.bf16.msra.mxu1 %v2999_v61 }
 0x1e8   : > { %1768 = vmatprep.subr.bf16.mxu1 %v2991_v50 }
 0x1eb   : > { %1769 = vmatpush1.bf16.msra.mxu1 %v2990_v53 }
 0x1ec   : > { %1770 = vmatprep.subr.bf16.mxu1 %v2982_v34 }
 0x1ef   : > { %1771 = vmatpush1.bf16.msra.mxu1 %v2981_v22 }
 0x1f2   : > { %3027 = vmatmul.mubr.msk.bf16.vlgmr.msra.gmra.mxu1 %vm1642_vm11, %v4452_v40 }
 0x1f3   : > { %1829 = vmatprep.mubr.bf16.mxu1 %v3216_v12 }
 0x203   : > { %v1293_v0 = vpop.permute.xlu1 %1292  ;;  %v1363_v25 = vpop.permute.xlu0 %1362 }
 0x204   : > { %v1298_v37 = vrot.slane %v1293_v0, 4  ;;  %v1368_v38 = vrot.slane %v1363_v25, 4 }
 0x206   : > { %v1308_v20 = vsel %vm1300_vm2, %v1293_v0, %v1298_v37  ;;  %v1376_v59 = vsel %vm1125_vm0, %v1367_v30, %v1368_v38  ;;  %v1378_v27 = vsel %vm1370_vm1, %v1363_v25, %v1368_v38  ;;  %v1306_v15 = vsel %vm1125_vm0, %v1297_v5, %v1298_v37 }
 0x207   : > { %1318 = vst.msk [vmem:[#allocation2 + $0xf8] sm:$0xf] %vm1108_vm4, %v1308_v20  ;;  %v1377_v2 = vsel %vm1370_vm1, %v4515_v36, %v1376_v59  ;;  %1388 = vst.msk [vmem:[#allocation2 + $0x140] sm:$0xf] %vm1108_vm4, %v1378_v27  ;;  %v1222_v57 = vpop.permute.xlu1 %1221  ;;  %v1328_v46 = vpop.permute.xlu0 %1327  ;;  %v1307_v63 = vsel %vm1300_vm2, %v4513_v35, %v1306_v15  ;;  %v4665_v27 = vld [vmem:[%s5105_s8] sm:$0xff] }
 0x208   : > { %v1227_v42 = vrot.slane %v1222_v57, 4  ;;  %1246 = vst.msk [vmem:[#allocation2 + $0xb0] sm:$0xf] %vm1108_vm4, %v1222_v57  ;;  %v1333_v58 = vrot.slane %v1328_v46, 4  ;;  %v3020_v30 = vcombine.high %v1377_v2, %v1377_v2  ;;  %v3019_v60 = vcombine.low %v1377_v2, %v1377_v2 }
 0x20a   : > { %v1341_v24 = vsel %vm1125_vm0, %v1332_v47, %v1333_v58  ;;  %v1343_v5 = vsel %vm1335_vm3, %v1328_v46, %v1333_v58  ;;  %3028 = vmatprep.subr.msk.bf16.mxu1 %vm1125_vm0, %v3020_v30  ;;  %v1666_v36 = vsel %vm1125_vm0, %v3019_v60, 0  ;;  %v1235_v44 = vsel %vm1125_vm0, %v1226_v48, %v1227_v42 }
 0x20b   : > { %v1342_v55 = vsel %vm1335_vm3, %v4526_v9, %v1341_v24  ;;  %1353 = vst.msk [vmem:[#allocation2 + $0x11c] sm:$0xf] %vm1108_vm4, %v1343_v5  ;;  %v1154_v4 = vpop.permute.xlu1 %1153  ;;  %v1256_v47 = vpop.permute.xlu0 %1255  ;;  %1804 = vmatpush1.bf16.msra.mxu1 %v1666_v36  ;;  %v1236_v9 = vsel %vm1038_vm5, %v4524_v39, %v1235_v44 }
 0x20c   : > { %v1159_v6 = vrot.slane %v1154_v4, 4  ;;  %1178 = vst.msk [vmem:[#allocation2 + $0x68] sm:$0xf] %vm1108_vm4, %v1154_v4  ;;  %v1261_v41 = vrot.slane %v1256_v47, 4  ;;  %1280 = vst.msk [vmem:[#allocation2 + $0xd4] sm:$0xf] %vm1108_vm4, %v1256_v47  ;;  %v3011_v3 = vcombine.high %v1307_v63, %v1342_v55  ;;  %v3010_v35 = vcombine.low %v1307_v63, %v1342_v55 }
 0x20e   : > { %v1269_v48 = vsel %vm1125_vm0, %v1260_v62, %v1261_v41  ;;  %v3190_v19 = vld [vmem:[#allocation2 + $0x140] ss:$0 sps:$4 sm:$0xff]   ;;  %1805 = vmatprep.subr.bf16.mxu1 %v3011_v3  ;;  %v1167_v1 = vsel %vm1125_vm0, %v1158_v52, %v1159_v6 }
 0x20f   : > { %v1270_v26 = vsel %vm1263_vm6, %v4540_v56, %v1269_v48  ;;  %v1119_v28 = vpop.permute.xlu1 %1118  ;;  %v1188_v43 = vpop.permute.xlu0 %1187  ;;  %1806 = vmatpush1.bf16.msra.mxu1 %v3010_v35  ;;  %v1672_v62 = vsel %vm1125_vm0, %v3190_v19, 0  ;;  %v1168_v31 = vsel %vm1161_vm7, %v4538_v23, %v1167_v1 }
 0x210   : > { %v1124_v32 = vrot.slane %v1119_v28, 4  ;;  %1144 = vst.msk [vmem:[#allocation2 + $0x44] sm:$0xf] %vm1108_vm4, %v1119_v28  ;;  %v1193_v51 = vrot.slane %v1188_v43, 4  ;;  %1212 = vst.msk [vmem:[#allocation2 + $0x8c] sm:$0xf] %vm1108_vm4, %v1188_v43  ;;  %v3002_v61 = vcombine.high %v1236_v9, %v1270_v26  ;;  %3119 = vmatpush3.bf16.msra.mxu0 %v1672_v62  ;;  %v3001_v39 = vcombine.low %v1236_v9, %v1270_v26 }
 0x211   : > { %3120 = vmatprep.subr.bf16.mxu0 %v3217_v49 }
 0x212   : > { %v1133_v52 = vsel %vm1125_vm0, %v1123_v54, %v1124_v32  ;;  %v1201_v56 = vsel %vm1125_vm0, %v1192_v29, %v1193_v51  ;;  %v3191_v50 = vld [vmem:[#allocation2 + $0xf8] ss:$36 sps:$4 sm:$0xff]   ;;  %1807 = vmatprep.subr.bf16.mxu1 %v3002_v61 }
 0x213   : > { %v1134_v53 = vsel %vm1127_vm9, %v4559_v21, %v1133_v52  ;;  %v1202_v34 = vsel %vm1195_vm8, %v4561_v45, %v1201_v56  ;;  %1808 = vmatpush1.bf16.msra.mxu1 %v3001_v39  ;;  %v3192_v0 = vld [vmem:[#allocation2 + $0xb0] ss:$36 sps:$4 sm:$0xff]  }
 0x214   : > { %v2993_v22 = vcombine.high %v1168_v31, %v1202_v34  ;;  %v2992_v54 = vcombine.low %v1168_v31, %v1202_v34  ;;  %3121 = vmatpush3.bf16.msra.mxu0 %v3191_v50  ;;  %v2984_v29 = vcombine.high %v4350_v18, %v1134_v53  ;;  %v2983_v23 = vcombine.low %v4350_v18, %v1134_v53 }
 0x215   : > { %3122 = vmatprep.subr.bf16.mxu0 %v3217_v49  ;;  %v1921_v18 = vlaneseq }
 0x216   : > { %1809 = vmatprep.subr.bf16.mxu1 %v2993_v22 }
 0x217   : > { %1810 = vmatpush1.bf16.msra.mxu1 %v2992_v54  ;;  %v3193_v21 = vld [vmem:[#allocation2 + $0x68] ss:$36 sps:$4 sm:$0xff]   ;;  %v3194_v45 = vld [vmem:[#allocation2 + $0x20] ss:$36 sps:$4 sm:$0xff]   ;;  %v4655_v25 = vshrl.u32 %v1921_v18, 7 }
 0x218   : > { %1811 = vmatprep.subr.bf16.mxu1 %v2984_v29  ;;  %3123 = vmatpush3.bf16.msra.mxu0 %v3192_v0 }
 0x219   : > { %3124 = vmatprep.subr.bf16.mxu0 %v3217_v49  ;;  %v1923_v38 = vsub.s32 0, %v4655_v25  ;;  %v1931_v4 = vsub.s32 2, %v4655_v25  ;;  %v1935_v41 = vsub.s32 3, %v4655_v25  ;;  %v1939_v56 = vsub.s32 4, %v4655_v25 }
 0x21a   : > { %v1943_v50 = vsub.s32 5, %v4655_v25 }
 0x21b   : > { %1812 = vmatpush1.bf16.msra.mxu1 %v2983_v23  ;;  %v1924_v42 = vrot.slane %v4665_v27, %v1923_v38  ;;  %v1932_v48 = vrot.slane %v4665_v27, %v1931_v4  ;;  %v1936_v28 = vrot.slane %v4665_v27, %v1935_v41  ;;  %v1940_v29 = vrot.slane %v4665_v27, %v1939_v56 }
 0x21c   : > { %3125 = vmatpush3.bf16.msra.mxu0 %v3193_v21  ;;  %v4657_v37 = vpop.permute.xlu0 %1881  ;;  %v4660_v59 = vpop.permute.xlu1 %1896  ;;  %v1944_v23 = vrot.slane %v4665_v27, %v1943_v50 }
 0x21d   : > { %3126 = vmatprep.subr.bf16.mxu0 %v3217_v49 }
 0x21e   : > { %3029 = vmatmul.mubr.msk.bf16.vlgmr.msra.gmra.mxu1 %vm1642_vm11, %v4452_v40 }
 0x21f   : > { %2651 = vmatprep.mubr.bf16.mxu1 %v3216_v12 }
 0x220   : > { %3127 = vmatpush3.bf16.msra.mxu0 %v3194_v45 }
 0x223   : > { %3129 = vmatmul.mubr.msk.bf16.vlgmr.msra.gmra.mxu0 %vm1642_vm11, %v4452_v40  ;;  %v1927_v40 = vsub.s32 1, %v4655_v25 }
 0x224   : > { %2692 = vmatprep.mubr.bf16.mxu0 %v3216_v12 }
 0x225   : > { %v1928_v24 = vrot.slane %v4665_v27, %v1927_v40 }
 0x26a   : > { %v1708_v20 = vpop.f32.mrf.mxu1 }
 0x26b   : > { %v1884_v15 = vmul.f32 %v4657_v37, %v1708_v20 }
 0x26c   : > { %v1710_v2 = vpop.f32.mrf.mxu1 }
 0x26d   : > { %v1885_v57 = vmul.f32 %v4657_v37, %v1710_v2  ;;  %v1899_v46 = vadd.f32 %v4660_v59, %v1884_v15  ;;  %v1947_v2 = vsub.s32 6, %v4655_v25 }
 0x26e   : > { %v1712_v58 = vpop.f32.mrf.mxu1 }
 0x26f   : > { %v1900_v30 = vadd.f32 %v4660_v59, %v1885_v57  ;;  %v1908_v60 = vmax.f32 %v1899_v46, 0.0  ;;  %v1951_v57 = vsub.s32 7, %v4655_v25 }
 0x270   : > { %v1713_v5 = vpop.f32.mrf.mxu1 }
 0x271   : > { %v1909_v36 = vmax.f32 %v1900_v30, 0.0  ;;  %v1966_v63 = vmul.f32 %v1924_v42, %v1908_v60 }
 0x273   : > { %v1967_v44 = vmul.f32 %v1928_v24, %v1909_v36  ;;  %v1948_v24 = vrot.slane %v4665_v27, %v1947_v2  ;;  %v1952_v36 = vrot.slane %v4665_v27, %v1951_v57 }
 0x275   : > { %v3170_v55 = vpack.i.bf16 %v1967_v44, %v1966_v63 }
 0x277   : > { %3171 = vrot.lane.b32.xlu1 %v3170_v55, %s3219_s28 }
 0x29e   : > { %v1749_v47 = vpop.f32.mrf.mxu1 }
 0x29f   : > { %v1886_v6 = vmul.f32 %v4657_v37, %v1749_v47 }
 0x2a0   : > { %v1751_v3 = vpop.f32.mrf.mxu1 }
 0x2a1   : > { %v1901_v35 = vadd.f32 %v4660_v59, %v1886_v6  ;;  %v1887_v19 = vmul.f32 %v4657_v37, %v1751_v3  ;;  %v3031_v3 = vld [vmem:[%s5105_s8 + $0x8] ss:$0 sm:$0xff] }
 0x2a2   : > { %v1753_v9 = vpop.f32.mrf.mxu1 }
 0x2a3   : > { %v1910_v1 = vmax.f32 %v1901_v35, 0.0  ;;  %v1902_v26 = vadd.f32 %v4660_v59, %v1887_v19 }
 0x2a4   : > { %v1754_v43 = vpop.f32.mrf.mxu1 }
 0x2a5   : > { %v1968_v32 = vmul.f32 %v1932_v48, %v1910_v1  ;;  %v1911_v51 = vmax.f32 %v1902_v26, 0.0 }
 0x2a7   : > { %v1969_v62 = vmul.f32 %v1936_v28, %v1911_v51 }
 0x2a9   : > { %v3175_v61 = vpack.i.bf16 %v1969_v62, %v1968_v32 }
 0x2ab   : > { %3176 = vrot.lane.b32.xlu0 %v3175_v61, %s3219_s28 }
 0x2b2   : > { %v1790_v39 = vpop.f32.mrf.mxu1 }
 0x2b3   : > { %v1888_v52 = vmul.f32 %v4657_v37, %v1790_v39 }
 0x2b4   : > { %v1792_v31 = vpop.f32.mrf.mxu1 }
 0x2b5   : > { %v1903_v53 = vadd.f32 %v4660_v59, %v1888_v52  ;;  %v1889_v34 = vmul.f32 %v4657_v37, %v1792_v31 }
 0x2b6   : > { %v1794_v22 = vpop.f32.mrf.mxu1 }
 0x2b7   : > { %v1912_v54 = vmax.f32 %v1903_v53, 0.0  ;;  %v1904_v0 = vadd.f32 %v4660_v59, %v1889_v34 }
 0x2b8   : > { %v1795_v21 = vpop.f32.mrf.mxu1 }
 0x2b9   : > { %v1913_v45 = vmax.f32 %v1904_v0, 0.0  ;;  %v1970_v18 = vmul.f32 %v1940_v29, %v1912_v54 }
 0x2bb   : > { %v1971_v38 = vmul.f32 %v1944_v23, %v1913_v45 }
 0x2bd   : > { %v3180_v20 = vpack.i.bf16 %v1971_v38, %v1970_v18 }
 0x2bf   : > { %3181 = vrot.lane.b32.xlu1 %v3180_v20, %s3219_s28 }
 0x2de   : > { %v1831_v15 = vpop.f32.mrf.mxu1 }
 0x2df   : > { %v1890_v40 = vmul.f32 %v4657_v37, %v1831_v15 }
 0x2e0   : > { %v1833_v46 = vpop.f32.mrf.mxu1 }
 0x2e1   : > { %v1905_v42 = vadd.f32 %v4660_v59, %v1890_v40  ;;  %v1891_v58 = vmul.f32 %v4657_v37, %v1833_v46  ;;  %v3220_v40 = vmov 0.0|0.0   ;;  %v2823_v46 = vld [vmem:[%s5103_s6] sm:$0xff] }
 0x2e2   : > { %v1835_v30 = vpop.f32.mrf.mxu1 }
 0x2e3   : > { %v1914_v60 = vmax.f32 %v1905_v42, 0.0  ;;  %v1906_v5 = vadd.f32 %v4660_v59, %v1891_v58  ;;  %v1872_v63 = vpop.f32.mrf.mxu0  ;;  %v2838_v58 = vld [vmem:[%s5104_s7] sm:$0xff] }
 0x2e4   : > { %v1836_v44 = vpop.f32.mrf.mxu1  ;;  %v1892_v55 = vmul.f32 %v4657_v37, %v1872_v63 }
 0x2e5   : > { %v1915_v4 = vmax.f32 %v1906_v5, 0.0  ;;  %v3130_v47 = vpop.f32.mrf.mxu0  ;;  %v1972_v6 = vmul.f32 %v1948_v24, %v1914_v60 }
 0x2e6   : > { %v1907_v25 = vadd.f32 %v4660_v59, %v1892_v55 }
 0x2e7   : > { %v1973_v41 = vmul.f32 %v1952_v36, %v1915_v4  ;;  %v1875_v35 = vpop.f32.mrf.mxu0 }
 0x2e8   : > { %v1916_v48 = vmax.f32 %v1907_v25, 0.0 }
 0x2e9   : > { %v3185_v19 = vpack.i.bf16 %v1973_v41, %v1972_v6  ;;  %v3172_v9 = vpop.permute.xlu1 %3171  ;;  %v3131_v27 = vpop.f32.mrf.mxu0 }
 0x2ea   : > { %v3174_v1 = vunpack.i.h.bf16 %v3172_v9  ;;  %v3173_v26 = vunpack.i.l.bf16 %v3172_v9  ;;  %v1974_v28 = vmul.f32 %v3031_v3, %v1916_v48 }
 0x2eb   : > { %3186 = vrot.lane.b32.xlu0 %v3185_v19, %s3219_s28 }
 0x2ec   : > { %v2003_v37 = vsel %vm2002_vm12, %v3173_v26, %v3174_v1  ;;  %v2020_v59 = vsel %vm2002_vm12, 0.0, %v3173_v26  ;;  %2000 = vrot.lane.b32.xlu1 %v1974_v28, %s3219_s28 }
 0x2ed   : > { %v4710_v43 = vpack.c.bf16 %v2003_v37, %v2020_v59 }
 0x2ef   : > { %2302 = vrot.lane.b32.xlu0 %v4710_v43, %s3209_s26 }
 0x2f3   : > { %2234 = vrot.lane.b32.xlu0 %v4710_v43, %s3208_s17 }
 0x2f7   : > { %2268 = vrot.lane.b32.xlu0 %v4710_v43, %s3210_s12 }
 0x2fb   : > { %2165 = vrot.lane.b32.xlu0 %v4710_v43, %s3211_s13 }
 0x2ff   : > { %2198 = vrot.lane.b32.xlu0 %v4710_v43, %s3212_s14 }
 0x303   : > { %2099 = vrot.lane.b32.xlu0 %v4710_v43, %s3213_s15 }
 0x307   : > { %2132 = vrot.lane.b32.xlu0 %v4710_v43, %s3214_s16 }
 0x30b   : > { %2066 = vrot.lane.b32.xlu0 %v4710_v43, %s3215_s18 }
 0x31d   : > { %v3177_v32 = vpop.permute.xlu0 %3176 }
 0x31e   : > { %v3179_v51 = vunpack.i.h.bf16 %v3177_v32  ;;  %v3178_v62 = vunpack.i.l.bf16 %v3177_v32 }
 0x320   : > { %v2004_v61 = vsel %vm2002_vm12, %v3174_v1, %v3178_v62  ;;  %v2005_v39 = vsel %vm2002_vm12, %v3178_v62, %v3179_v51 }
 0x321   : > { %v4730_v52 = vpack.c.bf16 %v2005_v39, %v2004_v61 }
 0x323   : > { %2304 = vrot.lane.b32.xlu1 %v4730_v52, %s3209_s26 }
 0x327   : > { %2236 = vrot.lane.b32.xlu1 %v4730_v52, %s3208_s17 }
 0x32b   : > { %2270 = vrot.lane.b32.xlu1 %v4730_v52, %s3210_s12 }
 0x32f   : > { %2167 = vrot.lane.b32.xlu1 %v4730_v52, %s3211_s13 }
 0x331   : > { %v3182_v56 = vpop.permute.xlu1 %3181 }
 0x332   : > { %v3184_v50 = vunpack.i.h.bf16 %v3182_v56  ;;  %v3183_v31 = vunpack.i.l.bf16 %v3182_v56 }
 0x333   : > { %2200 = vrot.lane.b32.xlu1 %v4730_v52, %s3212_s14 }
 0x334   : > { %v2006_v53 = vsel %vm2002_vm12, %v3179_v51, %v3183_v31  ;;  %v2007_v34 = vsel %vm2002_vm12, %v3183_v31, %v3184_v50 }
 0x335   : > { %v4744_v22 = vpack.c.bf16 %v2007_v34, %v2006_v53 }
 0x337   : > { %2101 = vrot.lane.b32.xlu1 %v4730_v52, %s3213_s15  ;;  %2306 = vrot.lane.b32.xlu0 %v4744_v22, %s3209_s26 }
 0x33b   : > { %2134 = vrot.lane.b32.xlu1 %v4730_v52, %s3214_s16  ;;  %2238 = vrot.lane.b32.xlu0 %v4744_v22, %s3208_s17 }
 0x33f   : > { %2068 = vrot.lane.b32.xlu1 %v4730_v52, %s3215_s18  ;;  %2169 = vrot.lane.b32.xlu0 %v4744_v22, %s3211_s13 }
 0x343   : > { %2272 = vrot.lane.b32.xlu1 %v4744_v22, %s3210_s12  ;;  %2103 = vrot.lane.b32.xlu0 %v4744_v22, %s3213_s15 }
 0x347   : > { %2202 = vrot.lane.b32.xlu1 %v4744_v22, %s3212_s14 }
 0x34b   : > { %2136 = vrot.lane.b32.xlu1 %v4744_v22, %s3214_s16 }
 0x35d   : > { %v3187_v54 = vpop.permute.xlu0 %3186 }
 0x35e   : > { %v3189_v29 = vunpack.i.h.bf16 %v3187_v54  ;;  %v3188_v0 = vunpack.i.l.bf16 %v3187_v54  ;;  %v2001_v23 = vpop.permute.xlu1 %2000 }
 0x360   : > { %v2008_v21 = vsel %vm2002_vm12, %v3184_v50, %v3188_v0  ;;  %v2009_v45 = vsel %vm2002_vm12, %v3188_v0, %v3189_v29  ;;  %v2010_v18 = vsel %vm2002_vm12, %v3189_v29, %v2001_v23 }
 0x361   : > { %v2022_v38 = vsel %vm2021_vm13, %v2010_v18, 0.0  ;;  %v4769_v20 = vpack.c.bf16 %v2009_v45, %v2008_v21  ;;  %v2303_v57 = vpop.permute.xlu0 %2302 }
 0x362   : > { %v2031_v15 = vpack.c.bf16 %v2022_v38, %v2022_v38 }
 0x363   : > { %2308 = vrot.lane.b32.xlu1 %v4769_v20, %s3209_s26  ;;  %2240 = vrot.lane.b32.xlu0 %v4769_v20, %s3208_s17 }
 0x364   : > { %2065 = vst.msk [vmem:[#allocation2 + $0x20] sm:$0xf] %vm1108_vm4, %v2031_v15  ;;  %v3037_v2 = vcombine.low %v2031_v15, %v3220_v40 }
 0x365   : > { %v2235_v42 = vpop.permute.xlu0 %2234 }
 0x366   : > { %v2244_v63 = vrot.slane %v2235_v42, 4 }
 0x367   : > { %2274 = vrot.lane.b32.xlu1 %v4769_v20, %s3210_s12  ;;  %2171 = vrot.lane.b32.xlu0 %v4769_v20, %s3211_s13 }
 0x369   : > { %v2269_v30 = vpop.permute.xlu0 %2268 }
 0x36b   : > { %2204 = vrot.lane.b32.xlu1 %v4769_v20, %s3212_s14  ;;  %2105 = vrot.lane.b32.xlu0 %v4769_v20, %s3213_s15 }
 0x36d   : > { %v2166_v60 = vpop.permute.xlu0 %2165 }
 0x36e   : > { %v2175_v48 = vrot.slane %v2166_v60, 4 }
 0x36f   : > { %2138 = vrot.lane.b32.xlu1 %v4769_v20, %s3214_s16  ;;  %2070 = vrot.lane.b32.xlu0 %v4744_v22, %s3215_s18 }
 0x371   : > { %v2199_v24 = vpop.permute.xlu0 %2198 }
 0x372   : > { %v2208_v59 = vrot.slane %v2199_v24, 4 }
 0x373   : > { %2072 = vrot.lane.b32.xlu1 %v4769_v20, %s3215_s18  ;;  %2310 = vrot.lane.b32.xlu0 %v3037_v2, %s3209_s26 }
 0x377   : > { %2242 = vrot.lane.b32.xlu1 %v3037_v2, %s3208_s17  ;;  %2276 = vrot.lane.b32.xlu0 %v3037_v2, %s3210_s12 }
 0x37b   : > { %2173 = vrot.lane.b32.xlu1 %v2031_v15, %s3211_s13  ;;  %2206 = vrot.lane.b32.xlu0 %v2031_v15, %s3212_s14  ;;  %s3146_s14 = smul.u32 144, %s5109_s10 }
 0x37f   : > { %2107 = vrot.lane.b32.xlu1 %v2031_v15, %s3213_s15  ;;  %2140 = vrot.lane.b32.xlu0 %v2031_v15, %s3214_s16 }
 0x383   : > { %2074 = vrot.lane.b32.xlu1 %v2031_v15, %s3215_s18  ;;  %2826 = vperm.xlu0 %3168, %v2823_v46   ;;  %s5044_s18 = scalar_lea.vmem %s5106_s9, %s3146_s14 }
 0x387   : > { %2841 = vperm.xlu1 %3169, %v2838_v58   ;;  %1020 = vrot.lane.b32.xlu0 %v4269_v7, %s3211_s13  ;;  %v2312_v7 = vrot.slane %v2303_v57, 4 }
 0x38b   : > { %1022 = vrot.lane.b32.xlu1 %v4271_v8, %s3211_s13  ;;  %1024 = vrot.lane.b32.xlu0 %v4277_v10, %s3211_s13 }
 0x38f   : > { %1026 = vrot.lane.b32.xlu1 %v4283_v11, %s3211_s13  ;;  %1028 = vrot.lane.b32.xlu0 %v4320_v13, %s3211_s13  ;;  %v2100_v11 = vpop.permute.xlu0 %2099 }
 0x390   : > { %v2109_v62 = vrot.slane %v2100_v11, 4 }
 0x393   : > { %1030 = vrot.lane.b32.xlu1 %v4322_v14, %s3211_s13  ;;  %1032 = vrot.lane.b32.xlu0 %v4336_v16, %s3211_s13  ;;  %v2133_v6 = vpop.permute.xlu0 %2132 }
 0x394   : > { %v2142_v0 = vrot.slane %v2133_v6, 4 }
 0x395   : > { %v2305_v5 = vpop.permute.xlu1 %2304 }
 0x396   : > { %v2313_v8 = vrot.slane %v2305_v5, 4 }
 0x397   : > { %1034 = vrot.lane.b32.xlu1 %v4342_v17, %s3211_s13  ;;  %1036 = vrot.lane.b32.xlu0 %v4384_v33, %s3211_s13  ;;  %v2278_v33 = vrot.slane %v2269_v30, 4  ;;  %v2067_v26 = vpop.permute.xlu0 %2066 }
 0x398   : > { %v2317_v10 = vsel %vm1125_vm0, %v2312_v7, %v2313_v8  ;;  %v2076_v58 = vrot.slane %v2067_v26, 4 }
 0x399   : > { %v2318_v13 = vsel %vm1370_vm1, %v2303_v57, %v2317_v10  ;;  %v2237_v36 = vpop.permute.xlu1 %2236 }
 0x39a   : > { %v2245_v14 = vrot.slane %v2237_v36, 4  ;;  %v3075_v44 = vcombine.high %v2318_v13, %v2318_v13  ;;  %v3074_v55 = vcombine.low %v2318_v13, %v2318_v13 }
 0x39c   : > { %v2249_v16 = vsel %vm1125_vm0, %v2244_v63, %v2245_v14  ;;  %3083 = vmatprep.subr.msk.bf16.mxu1 %vm1125_vm0, %v3075_v44  ;;  %v2593_v4 = vsel %vm1125_vm0, %v3074_v55, 0 }
 0x39d   : > { %v2250_v17 = vsel %vm1300_vm2, %v2235_v42, %v2249_v16  ;;  %v4828_v47 = vpop.permute.xlu1 %2270  ;;  %2626 = vmatpush1.bf16.msra.mxu1 %v2593_v4 }
 0x39e   : > { %v2279_v25 = vrot.slane %v4828_v47, 4 }
 0x3a0   : > { %v2283_v41 = vsel %vm1125_vm0, %v2278_v33, %v2279_v25 }
 0x3a1   : > { %v2284_v3 = vsel %vm1335_vm3, %v2269_v30, %v2283_v41  ;;  %v2168_v35 = vpop.permute.xlu1 %2167 }
 0x3a2   : > { %v2176_v19 = vrot.slane %v2168_v35, 4  ;;  %v3065_v9 = vcombine.low %v2250_v17, %v2284_v3  ;;  %v3066_v27 = vcombine.high %v2250_v17, %v2284_v3 }
 0x3a4   : > { %v2180_v1 = vsel %vm1125_vm0, %v2175_v48, %v2176_v19  ;;  %2627 = vmatprep.subr.bf16.mxu1 %v3066_v27 }
 0x3a5   : > { %v2181_v28 = vsel %vm1038_vm5, %v2166_v60, %v2180_v1  ;;  %v4837_v37 = vpop.permute.xlu1 %2200  ;;  %2628 = vmatpush1.bf16.msra.mxu1 %v3065_v9 }
 0x3a6   : > { %v2209_v32 = vrot.slane %v4837_v37, 4 }
 0x3a8   : > { %v2213_v51 = vsel %vm1125_vm0, %v2208_v59, %v2209_v32 }
 0x3a9   : > { %v2214_v61 = vsel %vm1263_vm6, %v2199_v24, %v2213_v51  ;;  %v2102_v39 = vpop.permute.xlu1 %2101  ;;  %v4842_v56 = vpop.permute.xlu0 %2306 }
 0x3aa   : > { %v2110_v50 = vrot.slane %v2102_v39, 4  ;;  %v2314_v31 = vrot.slane %v4842_v56, 4  ;;  %v3056_v53 = vcombine.low %v2181_v28, %v2214_v61  ;;  %v3057_v34 = vcombine.high %v2181_v28, %v2214_v61 }
 0x3ac   : > { %v2114_v54 = vsel %vm1125_vm0, %v2109_v62, %v2110_v50  ;;  %v2319_v29 = vsel %vm1125_vm0, %v2313_v8, %v2314_v31  ;;  %2629 = vmatprep.subr.bf16.mxu1 %v3057_v34 }
 0x3ad   : > { %v2115_v23 = vsel %vm1161_vm7, %v2100_v11, %v2114_v54  ;;  %v2320_v21 = vsel %vm1370_vm1, %v2305_v5, %v2319_v29  ;;  %v2135_v45 = vpop.permute.xlu1 %2134  ;;  %v4851_v18 = vpop.permute.xlu0 %2238  ;;  %2630 = vmatpush1.bf16.msra.mxu1 %v3056_v53 }
 0x3ae   : > { %v2143_v38 = vrot.slane %v2135_v45, 4  ;;  %v2246_v15 = vrot.slane %v4851_v18, 4  ;;  %v3077_v40 = vcombine.high %v2320_v21, %v2320_v21  ;;  %v3076_v2 = vcombine.low %v2320_v21, %v2320_v21 }
 0x3b0   : > { %v2147_v57 = vsel %vm1125_vm0, %v2142_v0, %v2143_v38  ;;  %v2251_v46 = vsel %vm1125_vm0, %v2245_v14, %v2246_v15  ;;  %3085 = vmatprep.subr.msk.bf16.mxu0 %vm1125_vm0, %v3077_v40  ;;  %v2599_v42 = vsel %vm1125_vm0, %v3076_v2, 0 }
 0x3b1   : > { %v2148_v30 = vsel %vm1195_vm8, %v2133_v6, %v2147_v57  ;;  %v2252_v60 = vsel %vm1300_vm2, %v2237_v36, %v2251_v46  ;;  %v4862_v24 = vpop.permute.xlu1 %2068  ;;  %v4864_v7 = vpop.permute.xlu0 %2169  ;;  %2667 = vmatpush1.bf16.msra.mxu0 %v2599_v42 }
 0x3b2   : > { %v2077_v5 = vrot.slane %v4862_v24, 4  ;;  %v2177_v8 = vrot.slane %v4864_v7, 4  ;;  %v3047_v10 = vcombine.low %v2115_v23, %v2148_v30  ;;  %v3048_v11 = vcombine.high %v2115_v23, %v2148_v30 }
 0x3b4   : > { %v2081_v13 = vsel %vm1125_vm0, %v2076_v58, %v2077_v5  ;;  %v2182_v63 = vsel %vm1125_vm0, %v2176_v19, %v2177_v8  ;;  %2631 = vmatprep.subr.bf16.mxu1 %v3048_v11  ;;  %v4889_v19 = vld [vmem:[%s5102_s5] sm:$0xf] }
 0x3b5   : > { %v2082_v36 = vsel %vm1127_vm9, %v2067_v26, %v2081_v13  ;;  %v2183_v14 = vsel %vm1038_vm5, %v2168_v35, %v2182_v63  ;;  %v2273_v44 = vpop.permute.xlu1 %2272  ;;  %v4874_v55 = vpop.permute.xlu0 %2103  ;;  %2632 = vmatpush1.bf16.msra.mxu1 %v3047_v10 }
 0x3b6   : > { %v2280_v16 = vrot.slane %v2273_v44, 4  ;;  %v2111_v4 = vrot.slane %v4874_v55, 4  ;;  %v3038_v17 = vcombine.low %v4710_v43, %v2082_v36  ;;  %v3039_v33 = vcombine.high %v4710_v43, %v2082_v36 }
 0x3b8   : > { %v2285_v6 = vsel %vm1125_vm0, %v2279_v25, %v2280_v16  ;;  %v2116_v41 = vsel %vm1125_vm0, %v2110_v50, %v2111_v4  ;;  %2633 = vmatprep.subr.bf16.mxu1 %v3039_v33 }
 0x3b9   : > { %v2286_v3 = vsel %vm1335_vm3, %v4828_v47, %v2285_v6  ;;  %v2117_v35 = vsel %vm1161_vm7, %v2102_v39, %v2116_v41  ;;  %v2203_v48 = vpop.permute.xlu1 %2202  ;;  %2634 = vmatpush1.bf16.msra.mxu1 %v3038_v17 }
 0x3ba   : > { %v2210_v43 = vrot.slane %v2203_v48, 4  ;;  %v3067_v9 = vcombine.low %v2252_v60, %v2286_v3  ;;  %v3068_v27 = vcombine.high %v2252_v60, %v2286_v3 }
 0x3bc   : > { %v2215_v25 = vsel %vm1125_vm0, %v2209_v32, %v2210_v43  ;;  %3084 = vmatmul.mubr.msk.bf16.vlgmr.msra.gmra.mxu1 %vm1642_vm11, %v4889_v19  ;;  %2668 = vmatprep.subr.bf16.mxu0 %v3068_v27 }
 0x3bd   : > { %v2216_v47 = vsel %vm1263_vm6, %v4837_v37, %v2215_v25  ;;  %v2137_v1 = vpop.permute.xlu1 %2136  ;;  %2669 = vmatpush1.bf16.msra.mxu0 %v3067_v9  ;;  %2733 = vmatprep.mubr.bf16.mxu1 %v3216_v12 }
 0x3be   : > { %v2144_v26 = vrot.slane %v2137_v1, 4  ;;  %v3058_v28 = vcombine.low %v2183_v14, %v2216_v47  ;;  %v3059_v59 = vcombine.high %v2183_v14, %v2216_v47 }
 0x3c0   : > { %v2149_v51 = vsel %vm1125_vm0, %v2143_v38, %v2144_v26  ;;  %2670 = vmatprep.subr.bf16.mxu0 %v3059_v59 }
 0x3c1   : > { %v2150_v62 = vsel %vm1195_vm8, %v2135_v45, %v2149_v51  ;;  %2671 = vmatpush1.bf16.msra.mxu0 %v3058_v28 }
 0x3c2   : > { %v3049_v32 = vcombine.low %v2117_v35, %v2150_v62  ;;  %v3050_v61 = vcombine.high %v2117_v35, %v2150_v62 }
 0x3c4   : > { %2672 = vmatprep.subr.bf16.mxu0 %v3050_v61 }
 0x3c5   : > { %2673 = vmatpush1.bf16.msra.mxu0 %v3049_v32 }
 0x3d5   : > { %v2309_v39 = vpop.permute.xlu1 %2308  ;;  %v4899_v50 = vpop.permute.xlu0 %2240 }
 0x3d6   : > { %v2315_v37 = vrot.slane %v2309_v39, 4  ;;  %v2247_v53 = vrot.slane %v4899_v50, 4 }
 0x3d8   : > { %v2321_v34 = vsel %vm1125_vm0, %v2314_v31, %v2315_v37  ;;  %v2253_v54 = vsel %vm1125_vm0, %v2246_v15, %v2247_v53 }
 0x3d9   : > { %v2322_v29 = vsel %vm1370_vm1, %v4842_v56, %v2321_v34  ;;  %v2254_v0 = vsel %vm1300_vm2, %v4851_v18, %v2253_v54  ;;  %v4914_v23 = vpop.permute.xlu1 %2274  ;;  %v4916_v21 = vpop.permute.xlu0 %2171 }
 0x3da   : > { %v2281_v45 = vrot.slane %v4914_v23, 4  ;;  %v2178_v31 = vrot.slane %v4916_v21, 4  ;;  %v3079_v38 = vcombine.high %v2322_v29, %v2322_v29  ;;  %v3078_v40 = vcombine.low %v2322_v29, %v2322_v29 }
 0x3dc   : > { %v2287_v15 = vsel %vm1125_vm0, %v2280_v16, %v2281_v45  ;;  %v2184_v56 = vsel %vm1125_vm0, %v2177_v8, %v2178_v31  ;;  %3087 = vmatprep.subr.msk.bf16.mxu1 %vm1125_vm0, %v3079_v38  ;;  %v2605_v18 = vsel %vm1125_vm0, %v3078_v40, 0 }
 0x3dd   : > { %v2288_v2 = vsel %vm1335_vm3, %v2273_v44, %v2287_v15  ;;  %v2185_v57 = vsel %vm1038_vm5, %v4864_v7, %v2184_v56  ;;  %v4931_v46 = vpop.permute.xlu1 %2204  ;;  %v4933_v42 = vpop.permute.xlu0 %2105  ;;  %2708 = vmatpush1.bf16.msra.mxu1 %v2605_v18 }
 0x3de   : > { %v2211_v58 = vrot.slane %v4931_v46, 4  ;;  %v2112_v30 = vrot.slane %v4933_v42, 4  ;;  %v3069_v60 = vcombine.low %v2254_v0, %v2288_v2  ;;  %v3070_v8 = vcombine.high %v2254_v0, %v2288_v2 }
 0x3e0   : > { %v2217_v10 = vsel %vm1125_vm0, %v2210_v43, %v2211_v58  ;;  %v2118_v11 = vsel %vm1125_vm0, %v2111_v4, %v2112_v30  ;;  %2709 = vmatprep.subr.bf16.mxu1 %v3070_v8 }
 0x3e1   : > { %v2218_v7 = vsel %vm1263_vm6, %v2203_v48, %v2217_v10  ;;  %v2119_v13 = vsel %vm1161_vm7, %v4874_v55, %v2118_v11  ;;  %v4946_v63 = vpop.permute.xlu1 %2138  ;;  %v2071_v36 = vpop.permute.xlu0 %2070  ;;  %2710 = vmatpush1.bf16.msra.mxu1 %v3069_v60 }
 0x3e2   : > { %v2145_v14 = vrot.slane %v4946_v63, 4  ;;  %v2078_v44 = vrot.slane %v2071_v36, 4  ;;  %v3060_v16 = vcombine.low %v2185_v57, %v2218_v7  ;;  %v3061_v17 = vcombine.high %v2185_v57, %v2218_v7 }
 0x3e4   : > { %v2151_v33 = vsel %vm1125_vm0, %v2144_v26, %v2145_v14  ;;  %v2083_v4 = vsel %vm1125_vm0, %v2077_v5, %v2078_v44  ;;  %2711 = vmatprep.subr.bf16.mxu1 %v3061_v17 }
 0x3e5   : > { %v2152_v55 = vsel %vm1195_vm8, %v2137_v1, %v2151_v33  ;;  %v2084_v6 = vsel %vm1127_vm9, %v4862_v24, %v2083_v4  ;;  %v4958_v41 = vpop.permute.xlu1 %2072  ;;  %v2311_v3 = vpop.permute.xlu0 %2310  ;;  %2712 = vmatpush1.bf16.msra.mxu1 %v3060_v16 }
 0x3e6   : > { %v2079_v35 = vrot.slane %v4958_v41, 4  ;;  %v2316_v48 = vrot.slane %v2311_v3, 4  ;;  %v3040_v43 = vcombine.low %v4730_v52, %v2084_v6  ;;  %v3041_v9 = vcombine.high %v4730_v52, %v2084_v6 }
 0x3e7   : > { %v3051_v27 = vcombine.low %v2119_v13, %v2152_v55  ;;  %v3052_v25 = vcombine.high %v2119_v13, %v2152_v55 }
 0x3e8   : > { %v2085_v5 = vsel %vm1125_vm0, %v2078_v44, %v2079_v35  ;;  %v2323_v47 = vsel %vm1125_vm0, %v2315_v37, %v2316_v48  ;;  %v2325_v24 = vsel %vm1370_vm1, %v2311_v3, %v2316_v48  ;;  %2674 = vmatprep.subr.bf16.mxu0 %v3041_v9 }
 0x3e9   : > { %v2086_v1 = vsel %vm1127_vm9, %v2071_v36, %v2085_v5  ;;  %v2324_v26 = vsel %vm1370_vm1, %v2309_v39, %v2323_v47  ;;  %2335 = vst.msk [vmem:[#allocation2 + $0x140] sm:$0xf] %vm1108_vm4, %v2325_v24  ;;  %v2243_v28 = vpop.permute.xlu1 %2242  ;;  %v2277_v59 = vpop.permute.xlu0 %2276  ;;  %2713 = vmatprep.subr.bf16.mxu1 %v3052_v25  ;;  %2675 = vmatpush1.bf16.msra.mxu0 %v3040_v43 }
 0x3ea   : > { %v2248_v52 = vrot.slane %v2243_v28, 4  ;;  %v2282_v51 = vrot.slane %v2277_v59, 4  ;;  %2714 = vmatpush1.bf16.msra.mxu1 %v3051_v27  ;;  %v3042_v62 = vcombine.low %v4744_v22, %v2086_v1  ;;  %v3043_v32 = vcombine.high %v4744_v22, %v2086_v1 }
 0x3eb   : > { %v3081_v61 = vcombine.high %v2324_v26, %v2324_v26  ;;  %v3080_v37 = vcombine.low %v2324_v26, %v2324_v26 }
 0x3ec   : > { %v2255_v34 = vsel %vm1125_vm0, %v2247_v53, %v2248_v52  ;;  %v2257_v39 = vsel %vm1300_vm2, %v2243_v28, %v2248_v52  ;;  %v2289_v54 = vsel %vm1125_vm0, %v2281_v45, %v2282_v51  ;;  %v2291_v29 = vsel %vm1335_vm3, %v2277_v59, %v2282_v51  ;;  %3086 = vmatmul.mubr.msk.bf16.vlgmr.msra.gmra.mxu0 %vm1642_vm11, %v4889_v19 }
 0x3ed   : > { %v2256_v22 = vsel %vm1300_vm2, %v4899_v50, %v2255_v34  ;;  %2267 = vst.msk [vmem:[#allocation2 + $0xf8] sm:$0xf] %vm1108_vm4, %v2257_v39  ;;  %v2290_v0 = vsel %vm1335_vm3, %v4914_v23, %v2289_v54  ;;  %2301 = vst.msk [vmem:[#allocation2 + $0x11c] sm:$0xf] %vm1108_vm4, %v2291_v29  ;;  %v2174_v53 = vpop.permute.xlu1 %2173  ;;  %v2207_v38 = vpop.permute.xlu0 %2206  ;;  %2715 = vmatprep.subr.bf16.mxu1 %v3043_v32  ;;  %3089 = vmatprep.subr.msk.bf16.mxu0 %vm1125_vm0, %v3081_v61  ;;  %v2611_v45 = vsel %vm1125_vm0, %v3080_v37, 0 }
 0x3ee   : > { %v2179_v40 = vrot.slane %v2174_v53, 4  ;;  %2197 = vst.msk [vmem:[#allocation2 + $0xb0] sm:$0xf] %vm1108_vm4, %v2174_v53  ;;  %v2212_v15 = vrot.slane %v2207_v38, 4  ;;  %2230 = vst.msk [vmem:[#allocation2 + $0xd4] sm:$0xf] %vm1108_vm4, %v2207_v38  ;;  %2716 = vmatpush1.bf16.msra.mxu1 %v3042_v62  ;;  %2749 = vmatpush1.bf16.msra.mxu0 %v2611_v45  ;;  %v3071_v50 = vcombine.low %v2256_v22, %v2290_v0 }
 0x3ef   : > { %v3072_v56 = vcombine.high %v2256_v22, %v2290_v0  ;;  %3132 = vmatprep.subr.bf16.mxu1 %v3217_v49  ;;  %2774 = vmatprep.mubr.bf16.mxu0 %v3216_v12 }
 0x3f0   : > { %v2186_v23 = vsel %vm1125_vm0, %v2178_v31, %v2179_v40  ;;  %v2219_v18 = vsel %vm1125_vm0, %v2211_v58, %v2212_v15  ;;  %v3195_v2 = vld [vmem:[#allocation2 + $0x140] ss:$0 sps:$4 sm:$0xff]  }
 0x3f1   : > { %2750 = vmatprep.subr.bf16.mxu0 %v3072_v56  ;;  %v2187_v57 = vsel %vm1038_vm5, %v4916_v21, %v2186_v23  ;;  %v2220_v60 = vsel %vm1263_vm6, %v4931_v46, %v2219_v18  ;;  %v2108_v8 = vpop.permute.xlu1 %2107  ;;  %v2141_v10 = vpop.permute.xlu0 %2140  ;;  %3088 = vmatmul.mubr.msk.bf16.vlgmr.msra.gmra.mxu1 %vm1642_vm11, %v4889_v19  ;;  %v2617_v58 = vsel %vm1125_vm0, %v3195_v2, 0 }
 0x3f2   : > { %v2113_v12 = vrot.slane %v2108_v8, 4  ;;  %2131 = vst.msk [vmem:[#allocation2 + $0x68] sm:$0xf] %vm1108_vm4, %v2108_v8  ;;  %v2146_v31 = vrot.slane %v2141_v10, 4  ;;  %2164 = vst.msk [vmem:[#allocation2 + $0x8c] sm:$0xf] %vm1108_vm4, %v2141_v10  ;;  %2751 = vmatpush1.bf16.msra.mxu0 %v3071_v50  ;;  %v3062_v11 = vcombine.low %v2187_v57, %v2220_v60  ;;  %3142 = vmatprep.mubr.msk.bf16.mxu1 %vm3218_vm10, %v3217_v49 }
 0x3f3   : > { %3133 = vmatpush3.bf16.msra.mxu1 %v2617_v58  ;;  %v3063_v21 = vcombine.high %v2187_v57, %v2220_v60 }
 0x3f4   : > { %v2120_v46 = vsel %vm1125_vm0, %v2112_v30, %v2113_v12  ;;  %v2153_v7 = vsel %vm1125_vm0, %v2145_v14, %v2146_v31  ;;  %3134 = vmatprep.subr.bf16.mxu1 %v3217_v49  ;;  %v3196_v13 = vld [vmem:[#allocation2 + $0xf8] ss:$36 sps:$4 sm:$0xff]  }
 0x3f5   : > { %v2121_v36 = vsel %vm1161_vm7, %v4933_v42, %v2120_v46  ;;  %v2154_v44 = vsel %vm1195_vm8, %v4946_v63, %v2153_v7  ;;  %v2075_v16 = vpop.permute.xlu1 %2074  ;;  %2752 = vmatprep.subr.bf16.mxu0 %v3063_v21  ;;  %v3197_v63 = vld [vmem:[#allocation2 + $0xb0] ss:$36 sps:$4 sm:$0xff]  }
 0x3f6   : > { %v2080_v17 = vrot.slane %v2075_v16, 4  ;;  %2098 = vst.msk [vmem:[#allocation2 + $0x44] sm:$0xf] %vm1108_vm4, %v2075_v16  ;;  %2753 = vmatpush1.bf16.msra.mxu0 %v3062_v11  ;;  %v3053_v30 = vcombine.low %v2121_v36, %v2154_v44  ;;  %v3054_v33 = vcombine.high %v2121_v36, %v2154_v44 }
 0x3f7   : > { %3135 = vmatpush3.bf16.msra.mxu1 %v3196_v13 }
 0x3f8   : > { %v2087_v14 = vsel %vm1125_vm0, %v2079_v35, %v2080_v17  ;;  %2754 = vmatprep.subr.bf16.mxu0 %v3054_v33  ;;  %3136 = vmatprep.subr.bf16.mxu1 %v3217_v49 }
 0x3f9   : > { %v2088_v42 = vsel %vm1127_vm9, %v4958_v41, %v2087_v14  ;;  %v3198_v6 = vld [vmem:[#allocation2 + $0x68] ss:$36 sps:$4 sm:$0xff]  }
 0x3fa   : > { %2755 = vmatpush1.bf16.msra.mxu0 %v3053_v30  ;;  %v3044_v4 = vcombine.low %v4769_v20, %v2088_v42  ;;  %v3045_v55 = vcombine.high %v4769_v20, %v2088_v42 }
 0x3fb   : > { %3137 = vmatpush3.bf16.msra.mxu1 %v3197_v63 }
 0x3fc   : > { %2756 = vmatprep.subr.bf16.mxu0 %v3045_v55  ;;  %3138 = vmatprep.subr.bf16.mxu1 %v3217_v49 }
 0x3fd   : > { %v3199_v41 = vld [vmem:[#allocation2 + $0x20] ss:$36 sps:$4 sm:$0xff]  }
 0x3fe   : > { %v5033_v3 = vpop.permute.xlu0 %2826  ;;  %2757 = vmatpush1.bf16.msra.mxu0 %v3044_v4 }
 0x3ff   : > { %3139 = vmatpush3.bf16.msra.mxu1 %v3198_v6 }
 0x400   : > { %3140 = vmatprep.subr.bf16.mxu1 %v3217_v49 }
 0x401   : > { %3090 = vmatmul.mubr.msk.bf16.vlgmr.msra.gmra.mxu0 %vm1642_vm11, %v4889_v19 }
 0x402   : > { %v5039_v35 = vpop.permute.xlu1 %2841  ;;  %v1021_v48 = vpop.permute.xlu0 %1020 }
 0x403   : > { %3141 = vmatpush3.bf16.msra.mxu1 %v3199_v41 }
 0x406   : > { %v1023_v20 = vpop.permute.xlu1 %1022  ;;  %v1025_v49 = vpop.permute.xlu0 %1024  ;;  %3143 = vmatmul.mubr.msk.bf16.vlgmr.msra.gmra.mxu1 %vm1642_vm11, %v4889_v19 }
 0x407   : > { %v1039_v43 = vsel %vm1038_vm5, %v1021_v48, %v1023_v20  ;;  %v1040_v9 = vsel %vm1038_vm5, %v1023_v20, %v1025_v49 }
 0x408   : > { %1056 = vst [vmem:[%s5044_s18] sm:$0xf] %v1039_v43  ;;  %1057 = vst [vmem:[%s5044_s18 + $0x8] sm:$0xf] %v1040_v9 }
 0x40a   : > { %v1027_v27 = vpop.permute.xlu1 %1026  ;;  %v1029_v25 = vpop.permute.xlu0 %1028 }
 0x40b   : > { %v1041_v5 = vsel %vm1038_vm5, %v1025_v49, %v1027_v27  ;;  %v1042_v47 = vsel %vm1038_vm5, %v1027_v27, %v1029_v25 }
 0x40c   : > { %1058 = vst [vmem:[%s5044_s18 + $0x10] sm:$0xf] %v1041_v5  ;;  %1059 = vst [vmem:[%s5044_s18 + $0x18] sm:$0xf] %v1042_v47 }
 0x40e   : > { %v1031_v24 = vpop.permute.xlu1 %1030  ;;  %v1033_v19 = vpop.permute.xlu0 %1032 }
 0x40f   : > { %v1043_v1 = vsel %vm1038_vm5, %v1029_v25, %v1031_v24  ;;  %v1044_v26 = vsel %vm1038_vm5, %v1031_v24, %v1033_v19 }
 0x410   : > { %1060 = vst [vmem:[%s5044_s18 + $0x20] sm:$0xf] %v1043_v1  ;;  %1061 = vst [vmem:[%s5044_s18 + $0x28] sm:$0xf] %v1044_v26 }
 0x412   : > { %v1035_v28 = vpop.permute.xlu1 %1034  ;;  %v1037_v59 = vpop.permute.xlu0 %1036 }
 0x413   : > { %v1045_v52 = vsel %vm1038_vm5, %v1033_v19, %v1035_v28  ;;  %v1046_v51 = vsel %vm1038_vm5, %v1035_v28, %v1037_v59  ;;  %1065 = vst.msk [vmem:[%s5044_s18 + $0x40] sm:$0xf] %vm1064_vm14, %v1037_v59 }
 0x414   : > { %1062 = vst [vmem:[%s5044_s18 + $0x30] sm:$0xf] %v1045_v52  ;;  %1063 = vst [vmem:[%s5044_s18 + $0x38] sm:$0xf] %v1046_v51 }
 0x47c   : > { %v2653_v62 = vpop.f32.mrf.mxu1 }
 0x47d   : > { %v2829_v32 = vmul.f32 %v5033_v3, %v2653_v62 }
 0x47e   : > { %v2655_v61 = vpop.f32.mrf.mxu1 }
 0x47f   : > { %v2844_v37 = vadd.f32 %v5039_v35, %v2829_v32  ;;  %v2830_v34 = vmul.f32 %v5033_v3, %v2655_v61 }
 0x480   : > { %v2657_v39 = vpop.f32.mrf.mxu1 }
 0x481   : > { %v2853_v54 = vmax.f32 %v2844_v37, 0.0  ;;  %v2845_v29 = vadd.f32 %v5039_v35, %v2830_v34 }
 0x482   : > { %v2658_v22 = vpop.f32.mrf.mxu1 }
 0x483   : > { %v2871_v0 = vrot.slane %v2853_v54, 4  ;;  %v2854_v53 = vmax.f32 %v2845_v29, 0.0 }
 0x485   : > { %2889 = vst [vmem:[%s5044_s18 + $0x48] ss:$-68 sps:$4 sm:$0xff] %v2871_v0   ;;  %v2872_v38 = vrot.slane %v2854_v53, 4 }
 0x487   : > { %2890 = vst [vmem:[%s5044_s18 + $0x50] ss:$-68 sps:$4 sm:$0xff] %v2872_v38  }
 0x4ac   : > { %v2694_v45 = vpop.f32.mrf.mxu0 }
 0x4ad   : > { %v2831_v40 = vmul.f32 %v5033_v3, %v2694_v45 }
 0x4ae   : > { %v2696_v15 = vpop.f32.mrf.mxu0 }
 0x4af   : > { %v2846_v50 = vadd.f32 %v5039_v35, %v2831_v40  ;;  %v2832_v56 = vmul.f32 %v5033_v3, %v2696_v15 }
 0x4b0   : > { %v2698_v23 = vpop.f32.mrf.mxu0 }
 0x4b1   : > { %v2855_v18 = vmax.f32 %v2846_v50, 0.0  ;;  %v2847_v2 = vadd.f32 %v5039_v35, %v2832_v56  ;;  %v2735_v57 = vpop.f32.mrf.mxu1 }
 0x4b2   : > { %v2833_v60 = vmul.f32 %v5033_v3, %v2735_v57  ;;  %v2699_v8 = vpop.f32.mrf.mxu0 }
 0x4b3   : > { %v2873_v10 = vrot.slane %v2855_v18, 4  ;;  %v2856_v12 = vmax.f32 %v2847_v2, 0.0  ;;  %v2737_v31 = vpop.f32.mrf.mxu1 }
 0x4b4   : > { %v2848_v58 = vadd.f32 %v5039_v35, %v2833_v60  ;;  %v2834_v11 = vmul.f32 %v5033_v3, %v2737_v31 }
 0x4b5   : > { %2891 = vst [vmem:[%s5044_s18 + $0x58] ss:$-68 sps:$4 sm:$0xff] %v2873_v10   ;;  %v2874_v21 = vrot.slane %v2856_v12, 4  ;;  %v2739_v46 = vpop.f32.mrf.mxu1 }
 0x4b6   : > { %v2857_v7 = vmax.f32 %v2848_v58, 0.0  ;;  %v2849_v13 = vadd.f32 %v5039_v35, %v2834_v11 }
 0x4b7   : > { %2892 = vst [vmem:[%s5044_s18 + $0x60] ss:$-68 sps:$4 sm:$0xff] %v2874_v21   ;;  %v2740_v36 = vpop.f32.mrf.mxu1 }
 0x4b8   : > { %v2875_v44 = vrot.slane %v2857_v7, 4  ;;  %v2858_v16 = vmax.f32 %v2849_v13, 0.0 }
 0x4ba   : > { %2893 = vst [vmem:[%s5044_s18 + $0x68] ss:$-68 sps:$4 sm:$0xff] %v2875_v44   ;;  %v2876_v17 = vrot.slane %v2858_v16, 4 }
 0x4bc   : > { %2894 = vst [vmem:[%s5044_s18 + $0x70] ss:$-68 sps:$4 sm:$0xff] %v2876_v17  }
 0x4c1   : > { %v2776_v30 = vpop.f32.mrf.mxu0 }
 0x4c2   : > { %v2835_v33 = vmul.f32 %v5033_v3, %v2776_v30 }
 0x4c3   : > { %v2778_v14 = vpop.f32.mrf.mxu0 }
 0x4c4   : > { %v2850_v42 = vadd.f32 %v5039_v35, %v2835_v33  ;;  %v2836_v63 = vmul.f32 %v5033_v3, %v2778_v14 }
 0x4c5   : > { %v2780_v4 = vpop.f32.mrf.mxu0 }
 0x4c6   : > { %v2859_v55 = vmax.f32 %v2850_v42, 0.0  ;;  %v2851_v6 = vadd.f32 %v5039_v35, %v2836_v63  ;;  %v2817_v41 = vpop.f32.mrf.mxu1 }
 0x4c7   : > { %v2837_v48 = vmul.f32 %v5033_v3, %v2817_v41  ;;  %v2781_v20 = vpop.f32.mrf.mxu0 }
 0x4c8   : > { %v2877_v49 = vrot.slane %v2859_v55, 4  ;;  %v2860_v43 = vmax.f32 %v2851_v6, 0.0  ;;  %v3144_v9 = vpop.f32.mrf.mxu1 }
 0x4c9   : > { %v2852_v27 = vadd.f32 %v5039_v35, %v2837_v48 }
 0x4ca   : > { %2895 = vst [vmem:[%s5044_s18 + $0x78] ss:$-68 sps:$4 sm:$0xff] %v2877_v49   ;;  %v2878_v25 = vrot.slane %v2860_v43, 4  ;;  %v2820_v5 = vpop.f32.mrf.mxu1 }
 0x4cb   : > { %v2861_v47 = vmax.f32 %v2852_v27, 0.0 }
 0x4cc   : > { %2896 = vst [vmem:[%s5044_s18 + $0x80] ss:$-68 sps:$4 sm:$0xff] %v2878_v25   ;;  %v3145_v24 = vpop.f32.mrf.mxu1 }
 0x4cd   : > { %v2879_v19 = vrot.slane %v2861_v47, 4 }
 0x4cf   : > { %2898 = vst.msk [vmem:[%s5044_s18 + $0x40] sm:$0xf0] %vm2897_vm15, %v2879_v19 }
 0x4d0   : > { %2907 = vst.msk [vmem:[%s5044_s18 + $0x88] sm:$0xf] %vm1108_vm4, %v2879_v19 }
 0x4d1 PF: > { %s19_s30 = sadd.s32 1, %s3206_s30  }
 0x4d2   : > { %p16_p4 = scmp.ge.s32.totalorder %s19_s30, 4  }
 0x4d4   :  { %18 = sbr.rel (!%p16_p4) target bundleno = 1 (0x1), region = 86 }

</bundles_post_ra>
